<compile_context>
chip_gen: v6e
topology: v6e:2x2x1
jax: 0.10.0
libtpu: 0.0.40
codegen_flags: <defaults>
</compile_context>

<pallas_src>
import math
from functools import partial

import jax
import jax.numpy as jnp
from jax import lax
from jax.experimental import pallas as pl
from jax.experimental.pallas import tpu as pltpu

LN2 = math.log(2.0)
T_BLK = 8                       # timesteps fused per grid step


# ---------------------------------------------------------------------------
# log Z = log |psi|^2 of the full MPS (batch independent, all f32)
# ---------------------------------------------------------------------------
def lognorm_kernel(vdk_ref, vmd_ref, e0r_ref, e0c_ref, e1r_ref, e1c_ref,
                   out_ref, sig_ref, acc_ref):
    """vdk_ref: (1, D, I*D)  [j, i*D+k] = A_t[i][j, k]
    vmd_ref: (1, D, I*D)  [m, i*D+j] = A_t[i][j, m]   (C_i^T slices)
    out_ref: (1, 1)       log Z
    sig_ref: (D, D)       density matrix carry (VMEM scratch)
    acc_ref: (1, 1)       accumulated log rescale factors
    """
    t = pl.program_id(0)
    n_t = pl.num_programs(0)
    D = sig_ref.shape[0]
    KD = vdk_ref.shape[2]
    I = KD // D

    @pl.when(t == 0)
    def _init():
        sig_ref[...] = e0c_ref[...] * e0r_ref[...]        # alpha alpha^T
        acc_ref[...] = jnp.zeros((1, 1), jnp.float32)

    v_dk = vdk_ref[0]                                     # (D, KD)
    v_md = vmd_ref[0]                                     # (D, KD)
    sigma = sig_ref[...]

    # P[:, i*D:(i+1)*D] = sigma @ C_i  -- one lane-dense (N = I*D) matmul.
    p = jnp.dot(sigma, v_dk, preferred_element_type=jnp.float32)   # (D, KD)

    # sigma_new = sum_i C_i^T (sigma C_i); tiny static loop, off critical path.
    new = jnp.zeros((D, D), jnp.float32)
    for i in range(I):
        c_t_i = v_md[:, i * D:(i + 1) * D]                # C_i^T
        p_i = p[:, i * D:(i + 1) * D]                     # sigma @ C_i
        new = new + jnp.dot(c_t_i, p_i, preferred_element_type=jnp.float32)

    # Frobenius rescale with log bookkeeping (mirrors TorchMPS get_log_norm).
    scale = jnp.sqrt(jnp.sum(new * new))
    sig_ref[...] = new * (1.0 / scale)
    acc_ref[...] = acc_ref[...] + jnp.log(scale)

    @pl.when(t == n_t - 1)
    def _final():
        z = jnp.sum(sig_ref[...] * (e1c_ref[...] * e1r_ref[...]))
        out_ref[...] = acc_ref[...] + jnp.log(z)


# ---------------------------------------------------------------------------
# Batched psi chain; each grid step processes T_BLK timesteps.
# ---------------------------------------------------------------------------
def probmps_kernel(idx_ref, w_ref, e0_ref, e1_ref, out_ref, h_ref, eacc_ref):
    """idx_ref:  (T_BLK, 1, B)   int32 symbols (front-padded with 0)
    w_ref:    (T_BLK, D, KD)  [s, m, i*D+j] = A_s[i][j, m]  (compute dtype)
    e0_ref:   (D, 1)  alpha (left boundary), f32
    e1_ref:   (D, 1)  omega (right boundary), f32
    out_ref:  (1, 1, B)  2*(log|psi| + log-rescale)  (log Z subtracted outside)
    h_ref:    (D, B)  hidden state h_t^T carry (VMEM scratch, f32)
    eacc_ref: (1, B)  accumulated power-of-two rescale exponents (int32)
    """
    tb = pl.program_id(1)
    n_tb = pl.num_programs(1)
    TB, D, KD = w_ref.shape
    I = KD // D
    B = idx_ref.shape[2]

    @pl.when(tb == 0)
    def _init():
        h_ref[...] = jnp.broadcast_to(e0_ref[...], (D, B))
        eacc_ref[...] = jnp.zeros((1, B), jnp.int32)

    # One-hot selection fused into the K = I*D contraction axis.  The row ->
    # symbol-block map is hoisted out of the time loop; selection is a single
    # compare per step (power-of-two D), instead of iota + 2 compares.
    if (D & (D - 1)) == 0:
        row_blk = (lax.broadcasted_iota(jnp.int32, (KD, B), 0)
                   >> (D.bit_length() - 1))                 # row // D

        def make_sel(idx_s):
            return row_blk == idx_s
    else:
        r = lax.broadcasted_iota(jnp.int32, (KD, B), 0)

        def make_sel(idx_s):
            lo = idx_s * D
            return jnp.logical_and(r >= lo, r < lo + D)

    h = h_ref[...]
    # Short fixed inner loop, unrolled at trace time: static slices of the
    # T_BLK weight/index block, one MXU matmul per step (K = I*D, N = B).
    for s in range(TB):
        sel = make_sel(idx_ref[s])                          # (KD, B)
        h_tiled = jnp.concatenate([h] * I, axis=0)          # (KD, B)
        xh = jnp.where(sel, h_tiled, 0.0).astype(w_ref.dtype)
        h = jnp.dot(w_ref[s], xh, preferred_element_type=jnp.float32)

    # Exact power-of-two rescale ONCE per block of T_BLK steps: exponent-bit
    # extraction (no log/floor on the critical path), int32 accumulation.
    m = jnp.max(jnp.abs(h), axis=0, keepdims=True)          # (1, B)
    e = (pltpu.bitcast(m, jnp.int32) >> 23) - 127
    e = jnp.where(m > 0.0, jnp.clip(e, -126, 126), 0)       # guard 0/subnormal
    s_inv = pltpu.bitcast((127 - e) << 23, jnp.float32)     # == 2^-e exactly
    h_ref[...] = h * s_inv
    eacc_ref[...] = eacc_ref[...] + e

    @pl.when(tb == n_tb - 1)
    def _final():
        # psi = omega . h_T as elementwise mul + sublane reduce (no N=1 matvec)
        psi = jnp.sum(e1_ref[...] * h_ref[...], axis=0, keepdims=True)  # (1,B)
        # TODO(synk): psi == 0 gives -inf log-prob (matches the module); clamp
        #             here if downstream code cannot handle -inf.
        out_ref[0] = 2.0 * (jnp.log(jnp.abs(psi))
                            + eacc_ref[...].astype(jnp.float32) * LN2)


@partial(jax.jit, static_argnames=("compute_dtype",))
def probmps_log_prob(input_data, core_tensors, edge_vecs,
                     compute_dtype=jnp.bfloat16):
    """log P(x) for discrete sequences. input_data: (seq_len, batch) int."""
    T, B = input_data.shape
    _, I, D, _ = core_tensors.shape
    KD = I * D

    # Batch tile: lane-dense 128; widen to 256 only when >= 2 batch tiles
    # remain (fills the 256-wide MXU on v6e/v7x while keeping both v7x
    # TensorCores busy; v5e's MXU is 128 wide either way).
    b_tile = 256 if B > 256 else 128
    B_pad = -(-B // b_tile) * b_tile
    nb = B_pad // b_tile

    # Timestep blocking: T_BLK steps per grid step; seq_len is front-padded
    # with exact identity cores (+ symbol 0) so padded steps leave h unchanged.
    t_blk = min(T_BLK, T)
    n_tb = -(-T // t_blk)
    T_pad = n_tb * t_blk
    pad_t = T_pad - T

    e0 = edge_vecs[0].astype(jnp.float32)
    e1 = edge_vecs[1].astype(jnp.float32)

    # ---- log Z: batch independent, f32, grid over seq_len (decoupled) ----
    cores_f32 = core_tensors.astype(jnp.float32)
    # (T, D, I*D): [t, j, i*D + k] = A_t[i][j, k]  (for sigma @ C_i)
    w_dk = jnp.transpose(cores_f32, (0, 2, 1, 3)).reshape(T, D, KD)
    # (T, D, I*D): [t, m, i*D + j] = A_t[i][j, m]  (C_i^T slices)
    w_md_f32 = jnp.transpose(cores_f32, (0, 3, 1, 2)).reshape(T, D, KD)

    log_norm = pl.pallas_call(
        lognorm_kernel,
        out_shape=jax.ShapeDtypeStruct((1, 1), jnp.float32),
        grid=(T,),
        in_specs=[
            pl.BlockSpec((1, D, KD), lambda t: (t, 0, 0)),
            pl.BlockSpec((1, D, KD), lambda t: (t, 0, 0)),
            pl.BlockSpec((1, D), lambda t: (0, 0)),
            pl.BlockSpec((D, 1), lambda t: (0, 0)),
            pl.BlockSpec((1, D), lambda t: (0, 0)),
            pl.BlockSpec((D, 1), lambda t: (0, 0)),
        ],
        out_specs=pl.BlockSpec((1, 1), lambda t: (0, 0)),
        scratch_shapes=[pltpu.VMEM((D, D), jnp.float32),
                        pltpu.VMEM((1, 1), jnp.float32)],
        compiler_params=pltpu.CompilerParams(
            dimension_semantics=("arbitrary",)),
    )(w_dk, w_md_f32, e0.reshape(1, D), e0.reshape(D, 1),
      e1.reshape(1, D), e1.reshape(D, 1))

    # ---- psi-path weights: cast FIRST, then transpose (fewer HBM passes);
    #      reuse the f32 layout when compute_dtype is already f32. ----
    if jnp.dtype(compute_dtype) == jnp.dtype(jnp.float32):
        w_psi = w_md_f32
    else:
        w_psi = jnp.transpose(core_tensors.astype(compute_dtype),
                              (0, 3, 1, 2)).reshape(T, D, KD)
    if pad_t:
        eye_blk = jnp.concatenate([jnp.eye(D, dtype=w_psi.dtype)] * I, axis=1)
        w_psi = jnp.concatenate(
            [jnp.broadcast_to(eye_blk, (pad_t, D, KD)), w_psi], axis=0)

    # int32 symbol indices, lane-dense batch axis (no (T, B, I) one-hot in HBM)
    idx = jnp.zeros((T_pad, 1, B_pad), jnp.int32)
    idx = idx.at[pad_t:, 0, :B].set(input_data.astype(jnp.int32))

    # ---- batched psi chain: grid (batch_tiles, time_blocks) ----
    two_log_psi = pl.pallas_call(
        probmps_kernel,
        out_shape=jax.ShapeDtypeStruct((nb, 1, b_tile), jnp.float32),
        grid=(nb, n_tb),
        in_specs=[
            pl.BlockSpec((t_blk, 1, b_tile), lambda b, t: (t, 0, b)),
            pl.BlockSpec((t_blk, D, KD), lambda b, t: (t, 0, 0)),
            pl.BlockSpec((D, 1), lambda b, t: (0, 0)),
            pl.BlockSpec((D, 1), lambda b, t: (0, 0)),
        ],
        out_specs=pl.BlockSpec((1, 1, b_tile), lambda b, t: (b, 0, 0)),
        scratch_shapes=[pltpu.VMEM((D, b_tile), jnp.float32),
                        pltpu.VMEM((1, b_tile), jnp.int32)],
        compiler_params=pltpu.CompilerParams(
            dimension_semantics=("parallel", "arbitrary"),
            vmem_limit_bytes=32 * 1024 * 1024),
    )(idx, w_psi, e0.reshape(D, 1), e1.reshape(D, 1))

    # log Z subtracted outside the kernel (keeps the two pallas_calls
    # independent so XLA can schedule them freely).
    return two_log_psi.reshape(B_pad)[:B] - log_norm[0, 0]


def reference_log_prob(input_data, core_tensors, edge_vecs,
                       compute_dtype=jnp.float32):
    """Pure-JAX reference mirroring the PyTorch forward semantics.

    With compute_dtype=float32 this is the exact module math; with bfloat16 it
    mirrors bf16 MXU inputs + f32 accumulation for the psi chain (log Z is
    always f32, as in the kernel).
    """
    T, B = input_data.shape
    _, I, D, _ = core_tensors.shape
    cores = core_tensors.astype(jnp.float32)
    e0 = edge_vecs[0].astype(jnp.float32)
    e1 = edge_vecs[1].astype(jnp.float32)

    cores_cd = cores.astype(compute_dtype)
    h = jnp.broadcast_to(e0[None, :], (B, D))
    for t in range(T):                                   # contract_matseq
        mats = cores_cd[t, input_data[t]]                # get_mat_slices
        h = jnp.einsum('bj,bjk->bk', h.astype(compute_dtype), mats,
                       preferred_element_type=jnp.float32)
    psi = h @ e1

    sigma = jnp.outer(e0, e0)                            # get_log_norm
    log_acc = jnp.float32(0.0)
    for t in range(T):
        sigma = jnp.einsum('ijk,jl,ilm->km', cores[t], sigma, cores[t])
        scale = jnp.sqrt(jnp.sum(sigma * sigma))
        sigma = sigma / scale
        log_acc = log_acc + jnp.log(scale)
    z = e1 @ sigma @ e1
    log_norm = jnp.log(z) + log_acc
    return 2.0 * jnp.log(jnp.abs(psi)) - log_norm


if __name__ == "__main__":
    def run_case(seq_len, batch, input_dim, bond_dim):
        key = jax.random.PRNGKey(0)
        k_core, k_edge, k_data = jax.random.split(key, 3)

        # near_eye_init: identity slices + small noise (deterministic)
        eye = jnp.eye(bond_dim, dtype=jnp.float32)
        core_tensors = (
            jnp.broadcast_to(eye, (seq_len, input_dim, bond_dim, bond_dim))
            + 0.01 * jax.random.normal(
                k_core, (seq_len, input_dim, bond_dim, bond_dim), jnp.float32))
        # edge_vecs = randn(2, D) / sqrt(D)
        edge_vecs = (jax.random.normal(k_edge, (2, bond_dim), jnp.float32)
                     / math.sqrt(bond_dim))
        # discrete input sequences (seq_len, batch)
        input_data = jax.random.randint(k_data, (seq_len, batch), 0, input_dim)

        # Full-f32 path vs exact module-semantics reference.
        lp_f32 = jax.block_until_ready(
            probmps_log_prob(input_data, core_tensors, edge_vecs,
                             compute_dtype=jnp.float32))
        ref_f32 = reference_log_prob(input_data, core_tensors, edge_vecs,
                                     compute_dtype=jnp.float32)
        assert lp_f32.shape == (batch,)
        assert bool(jnp.all(jnp.isfinite(lp_f32)))
        assert jnp.allclose(lp_f32, ref_f32, rtol=2e-3, atol=2e-3), (lp_f32,
                                                                     ref_f32)

        # Default bf16-MXU path (f32 accumulation) vs dtype-matched reference.
        lp_bf16 = jax.block_until_ready(
            probmps_log_prob(input_data, core_tensors, edge_vecs,
                             compute_dtype=jnp.bfloat16))
        ref_bf16 = reference_log_prob(input_data, core_tensors, edge_vecs,
                                      compute_dtype=jnp.bfloat16)
        assert lp_bf16.shape == (batch,)
        assert bool(jnp.all(jnp.isfinite(lp_bf16)))
        assert jnp.allclose(lp_bf16, ref_bf16, rtol=2e-2, atol=2e-2), (lp_bf16,
                                                                       ref_bf16)

    # Base config (seq_len multiple of T_BLK).
    run_case(seq_len=8, batch=8, input_dim=4, bond_dim=32)
    # seq_len NOT a multiple of T_BLK exercises the identity front-padding.
    run_case(seq_len=11, batch=8, input_dim=4, bond_dim=32)

    print("KERNEL_OK")
</pallas_src>

<mosaic_0001>
module attributes {stable_mosaic.version = 11 : i64} {
  func.func @lognorm_kernel(%arg0: i32, %arg1: memref<1x32x128xf32, #tpu.memory_space<vmem>>, %arg2: memref<1x32x128xf32, #tpu.memory_space<vmem>>, %arg3: memref<1x32xf32, #tpu.memory_space<vmem>>, %arg4: memref<32x1xf32, #tpu.memory_space<vmem>>, %arg5: memref<1x32xf32, #tpu.memory_space<vmem>>, %arg6: memref<32x1xf32, #tpu.memory_space<vmem>>, %arg7: memref<1x1xf32, #tpu.memory_space<vmem>>, %arg8: memref<32x32xf32, #tpu.memory_space<vmem>>, %arg9: memref<1x1xf32, #tpu.memory_space<vmem>>) attributes {dimension_semantics = [#tpu.dimension_semantics<arbitrary>], iteration_bounds = array<i64: 8>, scalar_prefetch = 0 : i64, scratch_operands = 2 : i64, tpu.core_type = #tpu.core_type<tc>, window_params = [{transform_indices = @transform_0, window_bounds = array<i64: 1, 32, 128>}, {transform_indices = @transform_1, window_bounds = array<i64: 1, 32, 128>}, {pipeline_mode = #tpu.pipeline_mode<synchronous>, transform_indices = @transform_2, window_bounds = array<i64: 1, 32>}, {pipeline_mode = #tpu.pipeline_mode<synchronous>, transform_indices = @transform_3, window_bounds = array<i64: 32, 1>}, {pipeline_mode = #tpu.pipeline_mode<synchronous>, transform_indices = @transform_4, window_bounds = array<i64: 1, 32>}, {pipeline_mode = #tpu.pipeline_mode<synchronous>, transform_indices = @transform_5, window_bounds = array<i64: 32, 1>}, {pipeline_mode = #tpu.pipeline_mode<synchronous>, transform_indices = @transform_6, window_bounds = array<i64: 1, 1>}]} {
    %c0_i32 = arith.constant 0 : i32
    %0 = arith.cmpi eq, %arg0, %c0_i32 : i32
    %1 = arith.extui %0 : i1 to i32
    %c0_i32_0 = arith.constant 0 : i32
    %2 = arith.cmpi ne, %1, %c0_i32_0 : i32
    scf.if %2 {
      %c0_22 = arith.constant 0 : index
      %c0_23 = arith.constant 0 : index
      %44 = vector.load %arg4[%c0_22, %c0_23] : memref<32x1xf32, #tpu.memory_space<vmem>>, vector<32x1xf32>
      %c0_24 = arith.constant 0 : index
      %c0_25 = arith.constant 0 : index
      %45 = vector.load %arg3[%c0_24, %c0_25] : memref<1x32xf32, #tpu.memory_space<vmem>>, vector<1x32xf32>
      %46 = vector.broadcast %44 : vector<32x1xf32> to vector<32x32xf32>
      %47 = vector.broadcast %45 : vector<1x32xf32> to vector<32x32xf32>
      %48 = arith.mulf %46, %47 : vector<32x32xf32>
      %c0_26 = arith.constant 0 : index
      %c0_27 = arith.constant 0 : index
      %49 = vector.load %arg8[%c0_26, %c0_27] : memref<32x32xf32, #tpu.memory_space<vmem>>, vector<32x32xf32>
      tpu.vector_store %arg8[%c0_26, %c0_27], %48 {strides = array<i32>} : memref<32x32xf32, #tpu.memory_space<vmem>>, vector<32x32xf32>,
      %cst_28 = arith.constant 0.000000e+00 : f32
      %50 = vector.broadcast %cst_28 : f32 to vector<1x1xf32>
      %c0_29 = arith.constant 0 : index
      %c0_30 = arith.constant 0 : index
      %51 = vector.load %arg9[%c0_29, %c0_30] : memref<1x1xf32, #tpu.memory_space<vmem>>, vector<1x1xf32>
      tpu.vector_store %arg9[%c0_29, %c0_30], %50 {strides = array<i32>} : memref<1x1xf32, #tpu.memory_space<vmem>>, vector<1x1xf32>,
    } else {
    }
    %c0 = arith.constant 0 : index
    %c0_1 = arith.constant 0 : index
    %c0_2 = arith.constant 0 : index
    %3 = vector.load %arg1[%c0, %c0_1, %c0_2] : memref<1x32x128xf32, #tpu.memory_space<vmem>>, vector<1x32x128xf32>
    %4 = vector.shape_cast %3 : vector<1x32x128xf32> to vector<32x128xf32>
    %c0_3 = arith.constant 0 : index
    %c0_4 = arith.constant 0 : index
    %c0_5 = arith.constant 0 : index
    %5 = vector.load %arg2[%c0_3, %c0_4, %c0_5] : memref<1x32x128xf32, #tpu.memory_space<vmem>>, vector<1x32x128xf32>
    %6 = vector.shape_cast %5 : vector<1x32x128xf32> to vector<32x128xf32>
    %c0_6 = arith.constant 0 : index
    %c0_7 = arith.constant 0 : index
    %7 = vector.load %arg8[%c0_6, %c0_7] : memref<32x32xf32, #tpu.memory_space<vmem>>, vector<32x32xf32>
    %cst = arith.constant dense<0.000000e+00> : vector<32x128xf32>
    %8 = tpu.matmul %7, %4, %cst {dimension_numbers = #tpu.dot_dimension_numbers<[1], [0], [0], [1], [0, 0, 1, 1], [], []>} : vector<32x32xf32>, vector<32x128xf32>, vector<32x128xf32> -> vector<32x128xf32>
    %cst_8 = arith.constant 0.000000e+00 : f32
    %9 = vector.broadcast %cst_8 : f32 to vector<32x32xf32>
    %10 = vector.extract_strided_slice %6 {offsets = [0, 0], sizes = [32, 32], strides = [1, 1]} : vector<32x128xf32> to vector<32x32xf32>
    %11 = vector.extract_strided_slice %8 {offsets = [0, 0], sizes = [32, 32], strides = [1, 1]} : vector<32x128xf32> to vector<32x32xf32>
    %cst_9 = arith.constant dense<0.000000e+00> : vector<32x32xf32>
    %12 = tpu.matmul %10, %11, %cst_9 {dimension_numbers = #tpu.dot_dimension_numbers<[1], [0], [0], [1], [0, 0, 1, 1], [], []>} : vector<32x32xf32>, vector<32x32xf32>, vector<32x32xf32> -> vector<32x32xf32>
    %13 = arith.addf %9, %12 : vector<32x32xf32>
    %14 = vector.extract_strided_slice %6 {offsets = [0, 32], sizes = [32, 32], strides = [1, 1]} : vector<32x128xf32> to vector<32x32xf32>
    %15 = vector.extract_strided_slice %8 {offsets = [0, 32], sizes = [32, 32], strides = [1, 1]} : vector<32x128xf32> to vector<32x32xf32>
    %cst_10 = arith.constant dense<0.000000e+00> : vector<32x32xf32>
    %16 = tpu.matmul %14, %15, %cst_10 {dimension_numbers = #tpu.dot_dimension_numbers<[1], [0], [0], [1], [0, 0, 1, 1], [], []>} : vector<32x32xf32>, vector<32x32xf32>, vector<32x32xf32> -> vector<32x32xf32>
    %17 = arith.addf %13, %16 : vector<32x32xf32>
    %18 = vector.extract_strided_slice %6 {offsets = [0, 64], sizes = [32, 32], strides = [1, 1]} : vector<32x128xf32> to vector<32x32xf32>
    %19 = vector.extract_strided_slice %8 {offsets = [0, 64], sizes = [32, 32], strides = [1, 1]} : vector<32x128xf32> to vector<32x32xf32>
    %cst_11 = arith.constant dense<0.000000e+00> : vector<32x32xf32>
    %20 = tpu.matmul %18, %19, %cst_11 {dimension_numbers = #tpu.dot_dimension_numbers<[1], [0], [0], [1], [0, 0, 1, 1], [], []>} : vector<32x32xf32>, vector<32x32xf32>, vector<32x32xf32> -> vector<32x32xf32>
    %21 = arith.addf %17, %20 : vector<32x32xf32>
    %22 = vector.extract_strided_slice %6 {offsets = [0, 96], sizes = [32, 32], strides = [1, 1]} : vector<32x128xf32> to vector<32x32xf32>
    %23 = vector.extract_strided_slice %8 {offsets = [0, 96], sizes = [32, 32], strides = [1, 1]} : vector<32x128xf32> to vector<32x32xf32>
    %cst_12 = arith.constant dense<0.000000e+00> : vector<32x32xf32>
    %24 = tpu.matmul %22, %23, %cst_12 {dimension_numbers = #tpu.dot_dimension_numbers<[1], [0], [0], [1], [0, 0, 1, 1], [], []>} : vector<32x32xf32>, vector<32x32xf32>, vector<32x32xf32> -> vector<32x32xf32>
    %25 = arith.addf %21, %24 : vector<32x32xf32>
    %26 = arith.mulf %25, %25 : vector<32x32xf32>
    %27 = vector.shape_cast %26 : vector<32x32xf32> to vector<1x32x32xf32>
    %cst_13 = arith.constant dense<0.000000e+00> : vector<1xf32>
    %28 = vector.multi_reduction <add>, %27, %cst_13 [1, 2] : vector<1x32x32xf32> to vector<1xf32>
    %29 = vector.shape_cast %28 : vector<1xf32> to vector<1x1x1xf32>
    %30 = vector.extract %29[0, 0, 0] : f32 from vector<1x1x1xf32>
    %31 = math.sqrt %30 : f32
    %cst_14 = arith.constant 1.000000e+00 : f32
    %32 = arith.divf %cst_14, %31 : f32
    %33 = vector.broadcast %32 : f32 to vector<32x32xf32>
    %34 = arith.mulf %25, %33 : vector<32x32xf32>
    %c0_15 = arith.constant 0 : index
    %c0_16 = arith.constant 0 : index
    %35 = vector.load %arg8[%c0_15, %c0_16] : memref<32x32xf32, #tpu.memory_space<vmem>>, vector<32x32xf32>
    tpu.vector_store %arg8[%c0_15, %c0_16], %34 {strides = array<i32>} : memref<32x32xf32, #tpu.memory_space<vmem>>, vector<32x32xf32>,
    %c0_17 = arith.constant 0 : index
    %c0_18 = arith.constant 0 : index
    %36 = vector.load %arg9[%c0_17, %c0_18] : memref<1x1xf32, #tpu.memory_space<vmem>>, vector<1x1xf32>
    %37 = math.log %31 : f32
    %38 = vector.broadcast %37 : f32 to vector<1x1xf32>
    %39 = arith.addf %36, %38 : vector<1x1xf32>
    %c0_19 = arith.constant 0 : index
    %c0_20 = arith.constant 0 : index
    %40 = vector.load %arg9[%c0_19, %c0_20] : memref<1x1xf32, #tpu.memory_space<vmem>>, vector<1x1xf32>
    tpu.vector_store %arg9[%c0_19, %c0_20], %39 {strides = array<i32>} : memref<1x1xf32, #tpu.memory_space<vmem>>, vector<1x1xf32>,
    %c7_i32 = arith.constant 7 : i32
    %41 = arith.cmpi eq, %arg0, %c7_i32 : i32
    %42 = arith.extui %41 : i1 to i32
    %c0_i32_21 = arith.constant 0 : i32
    %43 = arith.cmpi ne, %42, %c0_i32_21 : i32
    scf.if %43 {
      %c0_22 = arith.constant 0 : index
      %c0_23 = arith.constant 0 : index
      %44 = vector.load %arg8[%c0_22, %c0_23] : memref<32x32xf32, #tpu.memory_space<vmem>>, vector<32x32xf32>
      %c0_24 = arith.constant 0 : index
      %c0_25 = arith.constant 0 : index
      %45 = vector.load %arg6[%c0_24, %c0_25] : memref<32x1xf32, #tpu.memory_space<vmem>>, vector<32x1xf32>
      %c0_26 = arith.constant 0 : index
      %c0_27 = arith.constant 0 : index
      %46 = vector.load %arg5[%c0_26, %c0_27] : memref<1x32xf32, #tpu.memory_space<vmem>>, vector<1x32xf32>
      %47 = vector.broadcast %45 : vector<32x1xf32> to vector<32x32xf32>
      %48 = vector.broadcast %46 : vector<1x32xf32> to vector<32x32xf32>
      %49 = arith.mulf %47, %48 : vector<32x32xf32>
      %50 = arith.mulf %44, %49 : vector<32x32xf32>
      %51 = vector.shape_cast %50 : vector<32x32xf32> to vector<1x32x32xf32>
      %cst_28 = arith.constant dense<0.000000e+00> : vector<1xf32>
      %52 = vector.multi_reduction <add>, %51, %cst_28 [1, 2] : vector<1x32x32xf32> to vector<1xf32>
      %53 = vector.shape_cast %52 : vector<1xf32> to vector<1x1x1xf32>
      %54 = vector.extract %53[0, 0, 0] : f32 from vector<1x1x1xf32>
      %c0_29 = arith.constant 0 : index
      %c0_30 = arith.constant 0 : index
      %55 = vector.load %arg9[%c0_29, %c0_30] : memref<1x1xf32, #tpu.memory_space<vmem>>, vector<1x1xf32>
      %56 = math.log %54 : f32
      %57 = vector.broadcast %56 : f32 to vector<1x1xf32>
      %58 = arith.addf %55, %57 : vector<1x1xf32>
      %c0_31 = arith.constant 0 : index
      %c0_32 = arith.constant 0 : index
      %59 = vector.load %arg7[%c0_31, %c0_32] : memref<1x1xf32, #tpu.memory_space<vmem>>, vector<1x1xf32>
      tpu.vector_store %arg7[%c0_31, %c0_32], %58 {strides = array<i32>} : memref<1x1xf32, #tpu.memory_space<vmem>>, vector<1x1xf32>,
    } else {
    }
    return
  }
  func.func @transform_0(%arg0: i32) -> (i32, i32, i32) {
    %c0_i32 = arith.constant 0 : i32
    %c0_i32_0 = arith.constant 0 : i32
    %c0_i32_1 = arith.constant 0 : i32
    return %arg0, %c0_i32, %c0_i32_0 : i32, i32, i32
  }
  func.func @transform_1(%arg0: i32) -> (i32, i32, i32) {
    %c0_i32 = arith.constant 0 : i32
    %c0_i32_0 = arith.constant 0 : i32
    %c0_i32_1 = arith.constant 0 : i32
    return %arg0, %c0_i32, %c0_i32_0 : i32, i32, i32
  }
  func.func @transform_2(%arg0: i32) -> (i32, i32) {
    %c0_i32 = arith.constant 0 : i32
    %c0_i32_0 = arith.constant 0 : i32
    %c0_i32_1 = arith.constant 0 : i32
    return %c0_i32, %c0_i32_0 : i32, i32
  }
  func.func @transform_3(%arg0: i32) -> (i32, i32) {
    %c0_i32 = arith.constant 0 : i32
    %c0_i32_0 = arith.constant 0 : i32
    %c0_i32_1 = arith.constant 0 : i32
    return %c0_i32, %c0_i32_0 : i32, i32
  }
  func.func @transform_4(%arg0: i32) -> (i32, i32) {
    %c0_i32 = arith.constant 0 : i32
    %c0_i32_0 = arith.constant 0 : i32
    %c0_i32_1 = arith.constant 0 : i32
    return %c0_i32, %c0_i32_0 : i32, i32
  }
  func.func @transform_5(%arg0: i32) -> (i32, i32) {
    %c0_i32 = arith.constant 0 : i32
    %c0_i32_0 = arith.constant 0 : i32
    %c0_i32_1 = arith.constant 0 : i32
    return %c0_i32, %c0_i32_0 : i32, i32
  }
  func.func @transform_6(%arg0: i32) -> (i32, i32) {
    %c0_i32 = arith.constant 0 : i32
    %c0_i32_0 = arith.constant 0 : i32
    %c0_i32_1 = arith.constant 0 : i32
    return %c0_i32, %c0_i32_0 : i32, i32
  }
}

module attributes {stable_mosaic.version = 11 : i64} {
  func.func @probmps_kernel(%arg0: i32, %arg1: i32, %arg2: memref<8x1x128xi32, #tpu.memory_space<vmem>>, %arg3: memref<8x32x128xf32, #tpu.memory_space<vmem>>, %arg4: memref<32x1xf32, #tpu.memory_space<vmem>>, %arg5: memref<32x1xf32, #tpu.memory_space<vmem>>, %arg6: memref<1x1x128xf32, #tpu.memory_space<vmem>>, %arg7: memref<32x128xf32, #tpu.memory_space<vmem>>, %arg8: memref<1x128xi32, #tpu.memory_space<vmem>>) attributes {dimension_semantics = [#tpu.dimension_semantics<parallel>, #tpu.dimension_semantics<arbitrary>], iteration_bounds = array<i64: 1, 1>, scalar_prefetch = 0 : i64, scratch_operands = 2 : i64, tpu.core_type = #tpu.core_type<tc>, window_params = [{transform_indices = @transform_0, window_bounds = array<i64: 8, 1, 128>}, {transform_indices = @transform_1, window_bounds = array<i64: 8, 32, 128>}, {pipeline_mode = #tpu.pipeline_mode<synchronous>, transform_indices = @transform_2, window_bounds = array<i64: 32, 1>}, {pipeline_mode = #tpu.pipeline_mode<synchronous>, transform_indices = @transform_3, window_bounds = array<i64: 32, 1>}, {transform_indices = @transform_4, window_bounds = array<i64: 1, 1, 128>}]} {
    %c0_i32 = arith.constant 0 : i32
    %0 = arith.cmpi eq, %arg1, %c0_i32 : i32
    %1 = arith.extui %0 : i1 to i32
    %c0_i32_0 = arith.constant 0 : i32
    %2 = arith.cmpi ne, %1, %c0_i32_0 : i32
    scf.if %2 {
      %c0_71 = arith.constant 0 : index
      %c0_72 = arith.constant 0 : index
      %117 = vector.load %arg4[%c0_71, %c0_72] : memref<32x1xf32, #tpu.memory_space<vmem>>, vector<32x1xf32>
      %118 = vector.shape_cast %117 : vector<32x1xf32> to vector<32x1xf32>
      %119 = vector.broadcast %118 : vector<32x1xf32> to vector<32x128xf32>
      %c0_73 = arith.constant 0 : index
      %c0_74 = arith.constant 0 : index
      %120 = vector.load %arg7[%c0_73, %c0_74] : memref<32x128xf32, #tpu.memory_space<vmem>>, vector<32x128xf32>
      tpu.vector_store %arg7[%c0_73, %c0_74], %119 {strides = array<i32>} : memref<32x128xf32, #tpu.memory_space<vmem>>, vector<32x128xf32>,
      %c0_i32_75 = arith.constant 0 : i32
      %121 = vector.broadcast %c0_i32_75 : i32 to vector<1x128xi32>
      %c0_76 = arith.constant 0 : index
      %c0_77 = arith.constant 0 : index
      %122 = vector.load %arg8[%c0_76, %c0_77] : memref<1x128xi32, #tpu.memory_space<vmem>>, vector<1x128xi32>
      tpu.vector_store %arg8[%c0_76, %c0_77], %121 {strides = array<i32>} : memref<1x128xi32, #tpu.memory_space<vmem>>, vector<1x128xi32>,
    } else {
    }
    %3 = tpu.iota {dimensions = array<i32: 0>} : vector<128x128xi32>
    %c5_i32 = arith.constant 5 : i32
    %4 = vector.broadcast %c5_i32 : i32 to vector<128x128xi32>
    %5 = arith.shrsi %3, %4 : vector<128x128xi32>
    %c0 = arith.constant 0 : index
    %c0_1 = arith.constant 0 : index
    %6 = vector.load %arg7[%c0, %c0_1] : memref<32x128xf32, #tpu.memory_space<vmem>>, vector<32x128xf32>
    %c0_2 = arith.constant 0 : index
    %c0_3 = arith.constant 0 : index
    %c0_4 = arith.constant 0 : index
    %7 = vector.load %arg2[%c0_2, %c0_3, %c0_4] : memref<8x1x128xi32, #tpu.memory_space<vmem>>, vector<1x1x128xi32>
    %8 = vector.shape_cast %7 : vector<1x1x128xi32> to vector<1x128xi32>
    %9 = vector.broadcast %8 : vector<1x128xi32> to vector<128x128xi32>
    %10 = arith.cmpi eq, %5, %9 : vector<128x128xi32>
    %11 = tpu.concatenate %6, %6, %6, %6 in 0 : vector<32x128xf32>, vector<32x128xf32>, vector<32x128xf32>, vector<32x128xf32> -> vector<128x128xf32>
    %cst = arith.constant 0.000000e+00 : f32
    %12 = vector.broadcast %cst : f32 to vector<128x128xf32>
    %13 = arith.select %10, %11, %12 : vector<128x128xi1>, vector<128x128xf32>
    %c0_5 = arith.constant 0 : index
    %c0_6 = arith.constant 0 : index
    %c0_7 = arith.constant 0 : index
    %14 = vector.load %arg3[%c0_5, %c0_6, %c0_7] : memref<8x32x128xf32, #tpu.memory_space<vmem>>, vector<1x32x128xf32>
    %15 = vector.shape_cast %14 : vector<1x32x128xf32> to vector<32x128xf32>
    %cst_8 = arith.constant dense<0.000000e+00> : vector<32x128xf32>
    %16 = tpu.matmul %15, %13, %cst_8 {dimension_numbers = #tpu.dot_dimension_numbers<[1], [0], [0], [1], [0, 0, 1, 1], [], []>} : vector<32x128xf32>, vector<128x128xf32>, vector<32x128xf32> -> vector<32x128xf32>
    %c1 = arith.constant 1 : index
    %c0_9 = arith.constant 0 : index
    %c0_10 = arith.constant 0 : index
    %17 = vector.load %arg2[%c1, %c0_9, %c0_10] : memref<8x1x128xi32, #tpu.memory_space<vmem>>, vector<1x1x128xi32>
    %18 = vector.shape_cast %17 : vector<1x1x128xi32> to vector<1x128xi32>
    %19 = vector.broadcast %18 : vector<1x128xi32> to vector<128x128xi32>
    %20 = arith.cmpi eq, %5, %19 : vector<128x128xi32>
    %21 = tpu.concatenate %16, %16, %16, %16 in 0 : vector<32x128xf32>, vector<32x128xf32>, vector<32x128xf32>, vector<32x128xf32> -> vector<128x128xf32>
    %cst_11 = arith.constant 0.000000e+00 : f32
    %22 = vector.broadcast %cst_11 : f32 to vector<128x128xf32>
    %23 = arith.select %20, %21, %22 : vector<128x128xi1>, vector<128x128xf32>
    %c1_12 = arith.constant 1 : index
    %c0_13 = arith.constant 0 : index
    %c0_14 = arith.constant 0 : index
    %24 = vector.load %arg3[%c1_12, %c0_13, %c0_14] : memref<8x32x128xf32, #tpu.memory_space<vmem>>, vector<1x32x128xf32>
    %25 = vector.shape_cast %24 : vector<1x32x128xf32> to vector<32x128xf32>
    %cst_15 = arith.constant dense<0.000000e+00> : vector<32x128xf32>
    %26 = tpu.matmul %25, %23, %cst_15 {dimension_numbers = #tpu.dot_dimension_numbers<[1], [0], [0], [1], [0, 0, 1, 1], [], []>} : vector<32x128xf32>, vector<128x128xf32>, vector<32x128xf32> -> vector<32x128xf32>
    %c2 = arith.constant 2 : index
    %c0_16 = arith.constant 0 : index
    %c0_17 = arith.constant 0 : index
    %27 = vector.load %arg2[%c2, %c0_16, %c0_17] : memref<8x1x128xi32, #tpu.memory_space<vmem>>, vector<1x1x128xi32>
    %28 = vector.shape_cast %27 : vector<1x1x128xi32> to vector<1x128xi32>
    %29 = vector.broadcast %28 : vector<1x128xi32> to vector<128x128xi32>
    %30 = arith.cmpi eq, %5, %29 : vector<128x128xi32>
    %31 = tpu.concatenate %26, %26, %26, %26 in 0 : vector<32x128xf32>, vector<32x128xf32>, vector<32x128xf32>, vector<32x128xf32> -> vector<128x128xf32>
    %cst_18 = arith.constant 0.000000e+00 : f32
    %32 = vector.broadcast %cst_18 : f32 to vector<128x128xf32>
    %33 = arith.select %30, %31, %32 : vector<128x128xi1>, vector<128x128xf32>
    %c2_19 = arith.constant 2 : index
    %c0_20 = arith.constant 0 : index
    %c0_21 = arith.constant 0 : index
    %34 = vector.load %arg3[%c2_19, %c0_20, %c0_21] : memref<8x32x128xf32, #tpu.memory_space<vmem>>, vector<1x32x128xf32>
    %35 = vector.shape_cast %34 : vector<1x32x128xf32> to vector<32x128xf32>
    %cst_22 = arith.constant dense<0.000000e+00> : vector<32x128xf32>
    %36 = tpu.matmul %35, %33, %cst_22 {dimension_numbers = #tpu.dot_dimension_numbers<[1], [0], [0], [1], [0, 0, 1, 1], [], []>} : vector<32x128xf32>, vector<128x128xf32>, vector<32x128xf32> -> vector<32x128xf32>
    %c3 = arith.constant 3 : index
    %c0_23 = arith.constant 0 : index
    %c0_24 = arith.constant 0 : index
    %37 = vector.load %arg2[%c3, %c0_23, %c0_24] : memref<8x1x128xi32, #tpu.memory_space<vmem>>, vector<1x1x128xi32>
    %38 = vector.shape_cast %37 : vector<1x1x128xi32> to vector<1x128xi32>
    %39 = vector.broadcast %38 : vector<1x128xi32> to vector<128x128xi32>
    %40 = arith.cmpi eq, %5, %39 : vector<128x128xi32>
    %41 = tpu.concatenate %36, %36, %36, %36 in 0 : vector<32x128xf32>, vector<32x128xf32>, vector<32x128xf32>, vector<32x128xf32> -> vector<128x128xf32>
    %cst_25 = arith.constant 0.000000e+00 : f32
    %42 = vector.broadcast %cst_25 : f32 to vector<128x128xf32>
    %43 = arith.select %40, %41, %42 : vector<128x128xi1>, vector<128x128xf32>
    %c3_26 = arith.constant 3 : index
    %c0_27 = arith.constant 0 : index
    %c0_28 = arith.constant 0 : index
    %44 = vector.load %arg3[%c3_26, %c0_27, %c0_28] : memref<8x32x128xf32, #tpu.memory_space<vmem>>, vector<1x32x128xf32>
    %45 = vector.shape_cast %44 : vector<1x32x128xf32> to vector<32x128xf32>
    %cst_29 = arith.constant dense<0.000000e+00> : vector<32x128xf32>
    %46 = tpu.matmul %45, %43, %cst_29 {dimension_numbers = #tpu.dot_dimension_numbers<[1], [0], [0], [1], [0, 0, 1, 1], [], []>} : vector<32x128xf32>, vector<128x128xf32>, vector<32x128xf32> -> vector<32x128xf32>
    %c4 = arith.constant 4 : index
    %c0_30 = arith.constant 0 : index
    %c0_31 = arith.constant 0 : index
    %47 = vector.load %arg2[%c4, %c0_30, %c0_31] : memref<8x1x128xi32, #tpu.memory_space<vmem>>, vector<1x1x128xi32>
    %48 = vector.shape_cast %47 : vector<1x1x128xi32> to vector<1x128xi32>
    %49 = vector.broadcast %48 : vector<1x128xi32> to vector<128x128xi32>
    %50 = arith.cmpi eq, %5, %49 : vector<128x128xi32>
    %51 = tpu.concatenate %46, %46, %46, %46 in 0 : vector<32x128xf32>, vector<32x128xf32>, vector<32x128xf32>, vector<32x128xf32> -> vector<128x128xf32>
    %cst_32 = arith.constant 0.000000e+00 : f32
    %52 = vector.broadcast %cst_32 : f32 to vector<128x128xf32>
    %53 = arith.select %50, %51, %52 : vector<128x128xi1>, vector<128x128xf32>
    %c4_33 = arith.constant 4 : index
    %c0_34 = arith.constant 0 : index
    %c0_35 = arith.constant 0 : index
    %54 = vector.load %arg3[%c4_33, %c0_34, %c0_35] : memref<8x32x128xf32, #tpu.memory_space<vmem>>, vector<1x32x128xf32>
    %55 = vector.shape_cast %54 : vector<1x32x128xf32> to vector<32x128xf32>
    %cst_36 = arith.constant dense<0.000000e+00> : vector<32x128xf32>
    %56 = tpu.matmul %55, %53, %cst_36 {dimension_numbers = #tpu.dot_dimension_numbers<[1], [0], [0], [1], [0, 0, 1, 1], [], []>} : vector<32x128xf32>, vector<128x128xf32>, vector<32x128xf32> -> vector<32x128xf32>
    %c5 = arith.constant 5 : index
    %c0_37 = arith.constant 0 : index
    %c0_38 = arith.constant 0 : index
    %57 = vector.load %arg2[%c5, %c0_37, %c0_38] : memref<8x1x128xi32, #tpu.memory_space<vmem>>, vector<1x1x128xi32>
    %58 = vector.shape_cast %57 : vector<1x1x128xi32> to vector<1x128xi32>
    %59 = vector.broadcast %58 : vector<1x128xi32> to vector<128x128xi32>
    %60 = arith.cmpi eq, %5, %59 : vector<128x128xi32>
    %61 = tpu.concatenate %56, %56, %56, %56 in 0 : vector<32x128xf32>, vector<32x128xf32>, vector<32x128xf32>, vector<32x128xf32> -> vector<128x128xf32>
    %cst_39 = arith.constant 0.000000e+00 : f32
    %62 = vector.broadcast %cst_39 : f32 to vector<128x128xf32>
    %63 = arith.select %60, %61, %62 : vector<128x128xi1>, vector<128x128xf32>
    %c5_40 = arith.constant 5 : index
    %c0_41 = arith.constant 0 : index
    %c0_42 = arith.constant 0 : index
    %64 = vector.load %arg3[%c5_40, %c0_41, %c0_42] : memref<8x32x128xf32, #tpu.memory_space<vmem>>, vector<1x32x128xf32>
    %65 = vector.shape_cast %64 : vector<1x32x128xf32> to vector<32x128xf32>
    %cst_43 = arith.constant dense<0.000000e+00> : vector<32x128xf32>
    %66 = tpu.matmul %65, %63, %cst_43 {dimension_numbers = #tpu.dot_dimension_numbers<[1], [0], [0], [1], [0, 0, 1, 1], [], []>} : vector<32x128xf32>, vector<128x128xf32>, vector<32x128xf32> -> vector<32x128xf32>
    %c6 = arith.constant 6 : index
    %c0_44 = arith.constant 0 : index
    %c0_45 = arith.constant 0 : index
    %67 = vector.load %arg2[%c6, %c0_44, %c0_45] : memref<8x1x128xi32, #tpu.memory_space<vmem>>, vector<1x1x128xi32>
    %68 = vector.shape_cast %67 : vector<1x1x128xi32> to vector<1x128xi32>
    %69 = vector.broadcast %68 : vector<1x128xi32> to vector<128x128xi32>
    %70 = arith.cmpi eq, %5, %69 : vector<128x128xi32>
    %71 = tpu.concatenate %66, %66, %66, %66 in 0 : vector<32x128xf32>, vector<32x128xf32>, vector<32x128xf32>, vector<32x128xf32> -> vector<128x128xf32>
    %cst_46 = arith.constant 0.000000e+00 : f32
    %72 = vector.broadcast %cst_46 : f32 to vector<128x128xf32>
    %73 = arith.select %70, %71, %72 : vector<128x128xi1>, vector<128x128xf32>
    %c6_47 = arith.constant 6 : index
    %c0_48 = arith.constant 0 : index
    %c0_49 = arith.constant 0 : index
    %74 = vector.load %arg3[%c6_47, %c0_48, %c0_49] : memref<8x32x128xf32, #tpu.memory_space<vmem>>, vector<1x32x128xf32>
    %75 = vector.shape_cast %74 : vector<1x32x128xf32> to vector<32x128xf32>
    %cst_50 = arith.constant dense<0.000000e+00> : vector<32x128xf32>
    %76 = tpu.matmul %75, %73, %cst_50 {dimension_numbers = #tpu.dot_dimension_numbers<[1], [0], [0], [1], [0, 0, 1, 1], [], []>} : vector<32x128xf32>, vector<128x128xf32>, vector<32x128xf32> -> vector<32x128xf32>
    %c7 = arith.constant 7 : index
    %c0_51 = arith.constant 0 : index
    %c0_52 = arith.constant 0 : index
    %77 = vector.load %arg2[%c7, %c0_51, %c0_52] : memref<8x1x128xi32, #tpu.memory_space<vmem>>, vector<1x1x128xi32>
    %78 = vector.shape_cast %77 : vector<1x1x128xi32> to vector<1x128xi32>
    %79 = vector.broadcast %78 : vector<1x128xi32> to vector<128x128xi32>
    %80 = arith.cmpi eq, %5, %79 : vector<128x128xi32>
    %81 = tpu.concatenate %76, %76, %76, %76 in 0 : vector<32x128xf32>, vector<32x128xf32>, vector<32x128xf32>, vector<32x128xf32> -> vector<128x128xf32>
    %cst_53 = arith.constant 0.000000e+00 : f32
    %82 = vector.broadcast %cst_53 : f32 to vector<128x128xf32>
    %83 = arith.select %80, %81, %82 : vector<128x128xi1>, vector<128x128xf32>
    %c7_54 = arith.constant 7 : index
    %c0_55 = arith.constant 0 : index
    %c0_56 = arith.constant 0 : index
    %84 = vector.load %arg3[%c7_54, %c0_55, %c0_56] : memref<8x32x128xf32, #tpu.memory_space<vmem>>, vector<1x32x128xf32>
    %85 = vector.shape_cast %84 : vector<1x32x128xf32> to vector<32x128xf32>
    %cst_57 = arith.constant dense<0.000000e+00> : vector<32x128xf32>
    %86 = tpu.matmul %85, %83, %cst_57 {dimension_numbers = #tpu.dot_dimension_numbers<[1], [0], [0], [1], [0, 0, 1, 1], [], []>} : vector<32x128xf32>, vector<128x128xf32>, vector<32x128xf32> -> vector<32x128xf32>
    %87 = math.absf %86 : vector<32x128xf32>
    %cst_58 = arith.constant dense<0xFF800000> : vector<128xf32>
    %88 = vector.multi_reduction <maximumf>, %87, %cst_58 [0] : vector<32x128xf32> to vector<128xf32>
    %89 = vector.shape_cast %88 : vector<128xf32> to vector<1x128xf32>
    %90 = tpu.bitcast %89 : vector<1x128xf32> -> vector<1x128xi32>
    %c23_i32 = arith.constant 23 : i32
    %91 = vector.broadcast %c23_i32 : i32 to vector<1x128xi32>
    %92 = arith.shrsi %90, %91 : vector<1x128xi32>
    %c127_i32 = arith.constant 127 : i32
    %93 = vector.broadcast %c127_i32 : i32 to vector<1x128xi32>
    %94 = arith.subi %92, %93 : vector<1x128xi32>
    %cst_59 = arith.constant 0.000000e+00 : f32
    %95 = vector.broadcast %cst_59 : f32 to vector<1x128xf32>
    %96 = arith.cmpf ogt, %89, %95 : vector<1x128xf32>
    %c-126_i32 = arith.constant -126 : i32
    %c126_i32 = arith.constant 126 : i32
    %97 = vector.broadcast %c-126_i32 : i32 to vector<1x128xi32>
    %98 = arith.maxsi %97, %94 : vector<1x128xi32>
    %99 = vector.broadcast %c126_i32 : i32 to vector<1x128xi32>
    %100 = arith.minsi %99, %98 : vector<1x128xi32>
    %c0_i32_60 = arith.constant 0 : i32
    %101 = vector.broadcast %c0_i32_60 : i32 to vector<1x128xi32>
    %102 = arith.select %96, %100, %101 : vector<1x128xi1>, vector<1x128xi32>
    %c127_i32_61 = arith.constant 127 : i32
    %103 = vector.broadcast %c127_i32_61 : i32 to vector<1x128xi32>
    %104 = arith.subi %103, %102 : vector<1x128xi32>
    %c23_i32_62 = arith.constant 23 : i32
    %105 = vector.broadcast %c23_i32_62 : i32 to vector<1x128xi32>
    %106 = arith.shli %104, %105 : vector<1x128xi32>
    %107 = tpu.bitcast %106 : vector<1x128xi32> -> vector<1x128xf32>
    %108 = vector.broadcast %107 : vector<1x128xf32> to vector<32x128xf32>
    %109 = arith.mulf %86, %108 : vector<32x128xf32>
    %c0_63 = arith.constant 0 : index
    %c0_64 = arith.constant 0 : index
    %110 = vector.load %arg7[%c0_63, %c0_64] : memref<32x128xf32, #tpu.memory_space<vmem>>, vector<32x128xf32>
    tpu.vector_store %arg7[%c0_63, %c0_64], %109 {strides = array<i32>} : memref<32x128xf32, #tpu.memory_space<vmem>>, vector<32x128xf32>,
    %c0_65 = arith.constant 0 : index
    %c0_66 = arith.constant 0 : index
    %111 = vector.load %arg8[%c0_65, %c0_66] : memref<1x128xi32, #tpu.memory_space<vmem>>, vector<1x128xi32>
    %112 = arith.addi %111, %102 : vector<1x128xi32>
    %c0_67 = arith.constant 0 : index
    %c0_68 = arith.constant 0 : index
    %113 = vector.load %arg8[%c0_67, %c0_68] : memref<1x128xi32, #tpu.memory_space<vmem>>, vector<1x128xi32>
    tpu.vector_store %arg8[%c0_67, %c0_68], %112 {strides = array<i32>} : memref<1x128xi32, #tpu.memory_space<vmem>>, vector<1x128xi32>,
    %c0_i32_69 = arith.constant 0 : i32
    %114 = arith.cmpi eq, %arg1, %c0_i32_69 : i32
    %115 = arith.extui %114 : i1 to i32
    %c0_i32_70 = arith.constant 0 : i32
    %116 = arith.cmpi ne, %115, %c0_i32_70 : i32
    scf.if %116 {
      %c0_71 = arith.constant 0 : index
      %c0_72 = arith.constant 0 : index
      %117 = vector.load %arg5[%c0_71, %c0_72] : memref<32x1xf32, #tpu.memory_space<vmem>>, vector<32x1xf32>
      %c0_73 = arith.constant 0 : index
      %c0_74 = arith.constant 0 : index
      %118 = vector.load %arg7[%c0_73, %c0_74] : memref<32x128xf32, #tpu.memory_space<vmem>>, vector<32x128xf32>
      %119 = vector.broadcast %117 : vector<32x1xf32> to vector<32x128xf32>
      %120 = arith.mulf %119, %118 : vector<32x128xf32>
      %cst_75 = arith.constant dense<0.000000e+00> : vector<128xf32>
      %121 = vector.multi_reduction <add>, %120, %cst_75 [0] : vector<32x128xf32> to vector<128xf32>
      %122 = vector.shape_cast %121 : vector<128xf32> to vector<1x128xf32>
      %123 = math.absf %122 : vector<1x128xf32>
      %124 = math.log %123 : vector<1x128xf32>
      %c0_76 = arith.constant 0 : index
      %c0_77 = arith.constant 0 : index
      %125 = vector.load %arg8[%c0_76, %c0_77] : memref<1x128xi32, #tpu.memory_space<vmem>>, vector<1x128xi32>
      %126 = arith.sitofp %125 : vector<1x128xi32> to vector<1x128xf32>
      %cst_78 = arith.constant 0.693147182 : f32
      %127 = vector.broadcast %cst_78 : f32 to vector<1x128xf32>
      %128 = arith.mulf %126, %127 : vector<1x128xf32>
      %129 = arith.addf %124, %128 : vector<1x128xf32>
      %cst_79 = arith.constant 2.000000e+00 : f32
      %130 = vector.broadcast %cst_79 : f32 to vector<1x128xf32>
      %131 = arith.mulf %130, %129 : vector<1x128xf32>
      %c0_80 = arith.constant 0 : index
      %c0_81 = arith.constant 0 : index
      %c0_82 = arith.constant 0 : index
      %132 = vector.load %arg6[%c0_80, %c0_81, %c0_82] : memref<1x1x128xf32, #tpu.memory_space<vmem>>, vector<1x1x128xf32>
      %133 = vector.shape_cast %132 : vector<1x1x128xf32> to vector<1x128xf32>
      %134 = vector.shape_cast %131 : vector<1x128xf32> to vector<1x1x128xf32>
      tpu.vector_store %arg6[%c0_80, %c0_81, %c0_82], %134 {strides = array<i32>} : memref<1x1x128xf32, #tpu.memory_space<vmem>>, vector<1x1x128xf32>,
    } else {
    }
    return
  }
  func.func @transform_0(%arg0: i32, %arg1: i32) -> (i32, i32, i32) {
    %c0_i32 = arith.constant 0 : i32
    %c0_i32_0 = arith.constant 0 : i32
    return %arg1, %c0_i32, %arg0 : i32, i32, i32
  }
  func.func @transform_1(%arg0: i32, %arg1: i32) -> (i32, i32, i32) {
    %c0_i32 = arith.constant 0 : i32
    %c0_i32_0 = arith.constant 0 : i32
    %c0_i32_1 = arith.constant 0 : i32
    return %arg1, %c0_i32, %c0_i32_0 : i32, i32, i32
  }
  func.func @transform_2(%arg0: i32, %arg1: i32) -> (i32, i32) {
    %c0_i32 = arith.constant 0 : i32
    %c0_i32_0 = arith.constant 0 : i32
    %c0_i32_1 = arith.constant 0 : i32
    return %c0_i32, %c0_i32_0 : i32, i32
  }
  func.func @transform_3(%arg0: i32, %arg1: i32) -> (i32, i32) {
    %c0_i32 = arith.constant 0 : i32
    %c0_i32_0 = arith.constant 0 : i32
    %c0_i32_1 = arith.constant 0 : i32
    return %c0_i32, %c0_i32_0 : i32, i32
  }
  func.func @transform_4(%arg0: i32, %arg1: i32) -> (i32, i32, i32) {
    %c0_i32 = arith.constant 0 : i32
    %c0_i32_0 = arith.constant 0 : i32
    %c0_i32_1 = arith.constant 0 : i32
    return %arg0, %c0_i32, %c0_i32_0 : i32, i32, i32
  }
}

</mosaic_0001>

<bundles_post_ra>
// kernel: probmps_log_prob.2
= control target key start
LH: loop header
LB: loop body
LE: loop exit
PB: predicated region body
PF: predicated region fallthrough
CT: control target
= control target key end

     0   :  { %11 = vsyncpa [#allocation5], 0  ;;  %s1320_s21 = smov 0   ;;  %s1447_s0 = inlined_call_operand.vmem [shape: f32[8,32,128], index: 0, kind: input, shape index: {}]   ;;  %s1448_s1 = inlined_call_operand.vmem [shape: f32[8,32,128], index: 1, kind: input, shape index: {}]   ;;  %s1449_s2 = inlined_call_operand.vmem [shape: f32[1,32], index: 2, kind: input, shape index: {}]   ;;  %s1450_s3 = inlined_call_operand.vmem [shape: f32[32,1], index: 3, kind: input, shape index: {}]   ;;  %s1451_s4 = inlined_call_operand.vmem [shape: f32[1,32], index: 4, kind: input, shape index: {}]   ;;  %s1452_s5 = inlined_call_operand.vmem [shape: f32[32,1], index: 5, kind: input, shape index: {}]   ;;  %s1453_s6 = inlined_call_operand.hbm [shape: f32[1,1], index: 6, kind: output, shape index: {}]  }
   0x1 LB: > { %s1326_s22 = sadd.s32 4294967295, %s1276_s21   ;;  %p1044_p0 = scmp.ge.s32.totalorder %s1276_s21, 1  ;;  %s1276_s21 = sphi %s1320_s21, %s17_s21  }
   0x2   : > { %p218_p1 = scmp.lt.s32.totalorder %s1276_s21, 9 }
   0x4   : > { %p219_p2 = pnand %p1044_p0, %p218_p1 }
   0x5   : > { %p248_p3 = scmp.lt.s32.totalorder (!%p219_p2), %s1326_s22, 7  ;;  %p1049_p4 = scmp.ne.s32.totalorder (!%p219_p2), %s1326_s22, 0 }
   0x6   : > { %222 = sbr.rel (%p219_p2) target bundleno = 1477 (0x5c5), region = 44 }
   0xb   : > { %s249_s23 = scalar_select %p248_p3, %s1326_s22, 7 }
   0xc   : > { %261 = sbr.rel (%p1049_p4) target bundleno = 150 (0x96), region = 48 }
   0xd   : > { %s1077_s24 = sshll.u32 %s249_s23, 5 }
   0xe   : > { %s1335_s27 = scalar_lea.vmem %s1447_s0, %s1077_s24  ;;  %s1340_s30 = scalar_lea.vmem %s1448_s1, %s1077_s24 }
  0x11   : > { %v264_v0 = vld [vmem:[%s1450_s3 + $0x10] sm:$0xff]  ;;  %v262_v1 = vld [vmem:[%s1450_s3] sm:$0xff]  ;;  %v1278_v2 = vmov 0   ;;  %v265_v3 = vld [vmem:[%s1450_s3 + $0x18] sm:$0xff]  ;;  %vm302_vm0 = vcmask 0   ;;  %v1279_v5 = vmov 0.0  }
  0x12   : > { %1231 = vset.pattern.permute.xlu1 %v1278_v2  ;;  %1230 = vset.pattern.permute.xlu0 %v1278_v2  ;;  %v263_v4 = vld [vmem:[%s1450_s3 + $0x8] sm:$0xff]  ;;  %303 = vst.msk [vmem:[#allocation3] sm:$0x1] %vm302_vm0, %v1279_v5  ;;  %v1050_v6 = vld [vmem:[%s1449_s2] ss:$0 sm:$0xff]  ;;  %vm297_vm1 = vcmask 261120  }
  0x13   : > { %279 = vperm.xlu1 %1231, %v264_v0   ;;  %269 = vperm.xlu0 %1230, %v262_v1  }
  0x17   : > { %284 = vperm.xlu1 %1231, %v265_v3   ;;  %274 = vperm.xlu0 %1230, %v263_v4  }
  0x8e   : > { %v280_v7 = vpop.permute.xlu1 %279  ;;  %v270_v8 = vpop.permute.xlu0 %269 }
  0x8f   : > { %v295_v9 = vmul.f32 %v1050_v6, %v280_v7  ;;  %v293_v10 = vmul.f32 %v1050_v6, %v270_v8 }
  0x91   : > { %300 = vst.msk [vmem:[#allocation2 + $0x10] sm:$0xff] %vm297_vm1, %v295_v9  ;;  %298 = vst.msk [vmem:[#allocation2] sm:$0xff] %vm297_vm1, %v293_v10 }
  0x92   : > { %v285_v11 = vpop.permute.xlu1 %284  ;;  %v275_v12 = vpop.permute.xlu0 %274 }
  0x93   : > { %v296_v13 = vmul.f32 %v1050_v6, %v285_v11  ;;  %v294_v14 = vmul.f32 %v1050_v6, %v275_v12 }
  0x95   : > { %301 = vst.msk [vmem:[#allocation2 + $0x18] sm:$0xff] %vm297_vm1, %v296_v13  ;;  %299 = vst.msk [vmem:[#allocation2 + $0x8] sm:$0xff] %vm297_vm1, %v294_v14 }
  0x96 PF: > { %v307_v15 = vld [vmem:[%s1335_s27 + $0x18] sm:$0xff]  ;;  %v306_v16 = vld [vmem:[%s1335_s27 + $0x10] sm:$0xff]  ;;  %vm316_vm2 = vcmask 261120   ;;  %v305_v18 = vld [vmem:[%s1335_s27 + $0x8] sm:$0xff]  ;;  %s1280_s17 = smov 96   ;;  %s1281_s18 = smov 64  }
  0x97   : > { %1119 = vmatprep.subr.mxu0 %v307_v15  ;;  %v309_v19 = vld [vmem:[%s1340_s30 + $0x8] sm:$0xff]  ;;  %v308_v20 = vld [vmem:[%s1340_s30] sm:$0xff]  ;;  %v311_v22 = vld [vmem:[%s1340_s30 + $0x18] sm:$0xff]  ;;  %s1282_s19 = smov 32   ;;  %vm910_vm5 = vcmask 0   ;;  %p1071_p5 = scmp.ne.s32.totalorder %s1326_s22, 7 }
  0x98   : > { %v312_v17 = vld [vmem:[#allocation2] sm:$0xff]  ;;  %1120 = vmatpush3.msra.mxu0 %v307_v15  ;;  %420 = vrot.lane.b32.xlu1 %v309_v19, %s1280_s17  ;;  %v310_v23 = vld [vmem:[%s1340_s30 + $0x10] sm:$0xff] }
  0x99   : > { %1127 = vmatprep.mubr.msk.f32.mxu0 %vm316_vm2, %v312_v17  ;;  %1121 = vmatprep.subr.mxu0 %v306_v16  ;;  %v304_v21 = vld [vmem:[%s1335_s27] sm:$0xff]  ;;  %v314_v25 = vld [vmem:[#allocation2 + $0x10] sm:$0xff] }
  0x9a   : > { %1122 = vmatpush3.msra.mxu0 %v306_v16  ;;  %418 = vrot.lane.b32.xlu0 %v308_v20, %s1280_s17 }
  0x9b   : > { %1123 = vmatprep.subr.mxu0 %v305_v18 }
  0x9c   : > { %1124 = vmatpush3.msra.mxu0 %v305_v18  ;;  %v313_v24 = vld [vmem:[#allocation2 + $0x8] sm:$0xff]  ;;  %424 = vrot.lane.b32.xlu1 %v311_v22, %s1280_s17  ;;  %v315_v26 = vld [vmem:[#allocation2 + $0x18] sm:$0xff] }
  0x9d   : > { %1125 = vmatprep.subr.mxu0 %v304_v21 }
  0x9e   : > { %1126 = vmatpush3.msra.mxu0 %v304_v21  ;;  %422 = vrot.lane.b32.xlu0 %v310_v23, %s1280_s17 }
  0x9f   : > { %1128 = vmatmul.mubr.msk.f32.vlgmr.msra.gmra.mxu0 %vm316_vm2, %v313_v24 }
  0xa0   : > { %1130 = vmatprep.mubr.msk.f32.mxu0 %vm316_vm2, %v314_v25 }
  0xa3   : > { %1131 = vmatmul.mubr.msk.f32.gmra.mxu0 %vm316_vm2, %v315_v26 }
  0xa4   : > { %1155 = vmatprep.mubr.msk.f32.mxu0 %vm316_vm2, %v308_v20 }
 0x10a   : > { %v421_v32 = vpop.permute.xlu1 %420 }
 0x10c   : > { %v419_v27 = vpop.permute.xlu0 %418 }
 0x10d   : > { %1141 = vmatprep.mubr.msk.f32.mxu1 %vm316_vm2, %v419_v27 }
 0x10e   : > { %v425_v33 = vpop.permute.xlu1 %424 }
 0x110   : > { %v423_v34 = vpop.permute.xlu0 %422 }
 0x15f   : > { %v1129_v28 = vpop.f32.mrf.mxu0 }
 0x160   : > { %638 = vrot.lane.b32.xlu0 %v1129_v28, %s1281_s18  ;;  %432 = vrot.lane.b32.xlu1 %v1129_v28, %s1280_s17 }
 0x161   : > { %v395_v29 = vpop.f32.mrf.mxu0 }
 0x163   : > { %v1132_v30 = vpop.f32.mrf.mxu0 }
 0x164   : > { %430 = vrot.lane.b32.xlu1 %v395_v29, %s1280_s17  ;;  %436 = vrot.lane.b32.xlu0 %v1132_v30, %s1280_s17 }
 0x165   : > { %1147 = vmatprep.subr.mxu0 %v1132_v30  ;;  %v405_v31 = vpop.f32.mrf.mxu0 }
 0x166   : > { %1148 = vmatpush3.msra.mxu0 %v1132_v30 }
 0x167   : > { %1149 = vmatprep.subr.mxu0 %v405_v31 }
 0x168   : > { %1150 = vmatpush3.msra.mxu0 %v405_v31  ;;  %636 = vrot.lane.b32.xlu1 %v395_v29, %s1281_s18 }
 0x169   : > { %642 = vrot.lane.b32.xlu0 %v1132_v30, %s1281_s18  ;;  %1151 = vmatprep.subr.mxu0 %v1129_v28 }
 0x16a   : > { %1152 = vmatpush3.msra.mxu0 %v1129_v28 }
 0x16b   : > { %1153 = vmatprep.subr.mxu0 %v395_v29 }
 0x16c   : > { %1154 = vmatpush3.msra.mxu0 %v395_v29  ;;  %628 = vrot.lane.b32.xlu1 %v308_v20, %s1281_s18 }
 0x16d   : > { %434 = vrot.lane.b32.xlu0 %v405_v31, %s1280_s17  ;;  %1156 = vmatmul.mubr.msk.f32.vlgmr.msra.gmra.mxu0 %vm316_vm2, %v309_v19 }
 0x16e   : > { %1158 = vmatprep.mubr.msk.f32.mxu0 %vm316_vm2, %v310_v23 }
 0x170   : > { %632 = vrot.lane.b32.xlu1 %v310_v23, %s1281_s18 }
 0x171   : > { %759 = vrot.lane.b32.xlu0 %v1132_v30, %s1282_s19  ;;  %1159 = vmatmul.mubr.msk.f32.gmra.mxu0 %vm316_vm2, %v311_v22 }
 0x174   : > { %640 = vrot.lane.b32.xlu1 %v405_v31, %s1281_s18 }
 0x175   : > { %630 = vrot.lane.b32.xlu0 %v309_v19, %s1281_s18 }
 0x178   : > { %753 = vrot.lane.b32.xlu1 %v395_v29, %s1282_s19 }
 0x179   : > { %755 = vrot.lane.b32.xlu0 %v1129_v28, %s1282_s19 }
 0x17c   : > { %757 = vrot.lane.b32.xlu1 %v405_v31, %s1282_s19 }
 0x17d   : > { %634 = vrot.lane.b32.xlu0 %v311_v22, %s1281_s18 }
 0x180   : > { %747 = vrot.lane.b32.xlu1 %v309_v19, %s1282_s19 }
 0x181   : > { %745 = vrot.lane.b32.xlu0 %v308_v20, %s1282_s19 }
 0x184   : > { %751 = vrot.lane.b32.xlu1 %v311_v22, %s1282_s19 }
 0x185   : > { %749 = vrot.lane.b32.xlu0 %v310_v23, %s1282_s19 }
 0x1d2   : > { %v639_v35 = vpop.permute.xlu0 %638  ;;  %v433_v36 = vpop.permute.xlu1 %432 }
 0x1d6   : > { %v431_v37 = vpop.permute.xlu1 %430  ;;  %v437_v38 = vpop.permute.xlu0 %436 }
 0x1d7   : > { %1133 = vmatprep.subr.mxu1 %v437_v38 }
 0x1d8   : > { %1134 = vmatpush3.msra.mxu1 %v437_v38 }
 0x1da   : > { %v637_v39 = vpop.permute.xlu1 %636 }
 0x1db   : > { %v643_v40 = vpop.permute.xlu0 %642 }
 0x1de   : > { %v629_v41 = vpop.permute.xlu1 %628 }
 0x1df   : > { %v435_v42 = vpop.permute.xlu0 %434 }
 0x1e0   : > { %1135 = vmatprep.subr.mxu1 %v435_v42 }
 0x1e1   : > { %1136 = vmatpush3.msra.mxu1 %v435_v42 }
 0x1e2   : > { %1137 = vmatprep.subr.mxu1 %v433_v36  ;;  %v633_v43 = vpop.permute.xlu1 %632 }
 0x1e3   : > { %1138 = vmatpush3.msra.mxu1 %v433_v36  ;;  %v760_v44 = vpop.permute.xlu0 %759 }
 0x1e4   : > { %1139 = vmatprep.subr.mxu1 %v431_v37  ;;  %1175 = vmatprep.subr.mxu0 %v760_v44 }
 0x1e5   : > { %1140 = vmatpush3.msra.mxu1 %v431_v37  ;;  %1176 = vmatpush3.msra.mxu0 %v760_v44 }
 0x1e6   : > { %1142 = vmatmul.mubr.msk.f32.vlgmr.msra.gmra.mxu1 %vm316_vm2, %v421_v32  ;;  %1161 = vmatprep.subr.mxu1 %v643_v40  ;;  %v641_v45 = vpop.permute.xlu1 %640 }
 0x1e7   : > { %1144 = vmatprep.mubr.msk.f32.mxu1 %vm316_vm2, %v423_v34  ;;  %1162 = vmatpush3.msra.mxu1 %v643_v40  ;;  %v631_v46 = vpop.permute.xlu0 %630 }
 0x1e8   : > { %1163 = vmatprep.subr.mxu1 %v641_v45 }
 0x1e9   : > { %1164 = vmatpush3.msra.mxu1 %v641_v45 }
 0x1ea   : > { %1145 = vmatmul.mubr.msk.f32.gmra.mxu1 %vm316_vm2, %v425_v33  ;;  %1165 = vmatprep.subr.mxu1 %v639_v35  ;;  %v754_v47 = vpop.permute.xlu1 %753 }
 0x1eb   : > { %1166 = vmatpush3.msra.mxu1 %v639_v35  ;;  %1169 = vmatprep.mubr.msk.f32.mxu1 %vm316_vm2, %v629_v41  ;;  %v756_v48 = vpop.permute.xlu0 %755 }
 0x1ec   : > { %1167 = vmatprep.subr.mxu1 %v637_v39 }
 0x1ed   : > { %1168 = vmatpush3.msra.mxu1 %v637_v39 }
 0x1ee   : > { %1170 = vmatmul.mubr.msk.f32.vlgmr.msra.gmra.mxu1 %vm316_vm2, %v631_v46  ;;  %1189 = vmatprep.subr.mxu1 %v760_v44  ;;  %v758_v49 = vpop.permute.xlu1 %757 }
 0x1ef   : > { %1172 = vmatprep.mubr.msk.f32.mxu1 %vm316_vm2, %v633_v43  ;;  %1193 = vmatpush3.msra.mxu1 %v760_v44  ;;  %v635_v50 = vpop.permute.xlu0 %634 }
 0x1f0   : > { %1177 = vmatprep.subr.mxu0 %v758_v49  ;;  %1190 = vmatprep.subr.mxu1 %v758_v49 }
 0x1f1   : > { %1178 = vmatpush3.msra.mxu0 %v758_v49  ;;  %1194 = vmatpush3.msra.mxu1 %v758_v49 }
 0x1f2   : > { %1173 = vmatmul.mubr.msk.f32.gmra.mxu1 %vm316_vm2, %v635_v50  ;;  %1179 = vmatprep.subr.mxu0 %v756_v48  ;;  %v748_v51 = vpop.permute.xlu1 %747 }
 0x1f3   : > { %1191 = vmatprep.subr.mxu1 %v756_v48  ;;  %v746_v52 = vpop.permute.xlu0 %745  ;;  %1180 = vmatpush3.msra.mxu0 %v756_v48 }
 0x1f4   : > { %1195 = vmatpush3.msra.mxu1 %v756_v48  ;;  %1181 = vmatprep.subr.mxu0 %v754_v47 }
 0x1f5   : > { %1192 = vmatprep.subr.mxu1 %v754_v47  ;;  %1183 = vmatprep.mubr.msk.f32.mxu0 %vm316_vm2, %v746_v52  ;;  %v903_v52 = vld [vmem:[#allocation3] sm:$0x1] }
 0x1f6   : > { %1182 = vmatpush3.msra.mxu0 %v754_v47  ;;  %1196 = vmatpush3.msra.mxu1 %v754_v47  ;;  %v752_v53 = vpop.permute.xlu1 %751 }
 0x1f7   : > { %1184 = vmatmul.mubr.msk.f32.vlgmr.msra.gmra.mxu0 %vm316_vm2, %v748_v51  ;;  %v750_v54 = vpop.permute.xlu0 %749 }
 0x1f8   : > { %1186 = vmatprep.mubr.msk.f32.mxu1 %vm316_vm2, %v750_v54 }
 0x1f9   : > { %1187 = vmatmul.mubr.msk.f32.vlgmr.msra.gmra.mxu1 %vm316_vm2, %v752_v53 }
 0x22d   : > { %v1157_v57 = vpop.f32.mrf.mxu0 }
 0x22f   : > { %v609_v60 = vpop.f32.mrf.mxu0 }
 0x231   : > { %v1160_v63 = vpop.f32.mrf.mxu0 }
 0x233   : > { %v619_v2 = vpop.f32.mrf.mxu0 }
 0x2a6   : > { %v1143_v55 = vpop.f32.mrf.mxu1 }
 0x2a7   : > { %v615_v1 = vadd.f32 %v1157_v57, %v1143_v55 }
 0x2a8   : > { %v516_v56 = vpop.f32.mrf.mxu1 }
 0x2a9   : > { %v610_v3 = vadd.f32 %v609_v60, %v516_v56 }
 0x2aa   : > { %v1146_v58 = vpop.f32.mrf.mxu1 }
 0x2ab   : > { %v625_v4 = vadd.f32 %v1160_v63, %v1146_v58 }
 0x2ac   : > { %v526_v59 = vpop.f32.mrf.mxu1 }
 0x2ad   : > { %v620_v8 = vadd.f32 %v619_v2, %v526_v59 }
 0x2ae   : > { %v1171_v61 = vpop.f32.mrf.mxu1 }
 0x2af   : > { %v742_v5 = vadd.f32 %v1171_v61, %v615_v1 }
 0x2b0   : > { %v722_v62 = vpop.f32.mrf.mxu1 }
 0x2b1   : > { %v741_v9 = vadd.f32 %v722_v62, %v610_v3 }
 0x2b2   : > { %v1174_v0 = vpop.f32.mrf.mxu1 }
 0x2b3   : > { %v744_v10 = vadd.f32 %v1174_v0, %v625_v4 }
 0x2b4   : > { %v732_v6 = vpop.f32.mrf.mxu1 }
 0x2b5   : > { %v743_v14 = vadd.f32 %v732_v6, %v620_v8 }
 0x2b7   : > { %v1185_v7 = vpop.f32.mrf.mxu0 }
 0x2b8   : > { %v859_v11 = vadd.f32 %v1185_v7, %v742_v5 }
 0x2b9   : > { %v839_v12 = vpop.f32.mrf.mxu0  ;;  %v1188_v13 = vpop.f32.mrf.mxu1 }
 0x2ba   : > { %v863_v15 = vmul.f32 %v859_v11, %v859_v11  ;;  %v858_v16 = vadd.f32 %v839_v12, %v741_v9  ;;  %v861_v17 = vadd.f32 %v1188_v13, %v744_v10 }
 0x2bb   : > { %v849_v18 = vpop.f32.mrf.mxu1 }
 0x2bc   : > { %v862_v19 = vmul.f32 %v858_v16, %v858_v16  ;;  %v860_v20 = vadd.f32 %v849_v18, %v743_v14  ;;  %v867_v21 = vsel %vm316_vm2, %v863_v15, 0.0  ;;  %v865_v23 = vmul.f32 %v861_v17, %v861_v17 }
 0x2be   : > { %v866_v22 = vsel %vm316_vm2, %v862_v19, 0.0  ;;  %v864_v24 = vmul.f32 %v860_v20, %v860_v20  ;;  %v871_v28 = vsel %vm316_vm2, %v865_v23, 0.0 }
 0x2bf   : > { %v868_v25 = vadd.f32 %v867_v21, %v866_v22 }
 0x2c0   : > { %v869_v26 = vsel %vm316_vm2, %v864_v24, 0.0 }
 0x2c1   : > { %v870_v27 = vadd.f32 %v869_v26, %v868_v25 }
 0x2c3   : > { %v872_v29 = vadd.f32 %v871_v28, %v870_v27 }
 0x2c5   : > { %873 = vadd.xlane.f32.xlu0 %v872_v29 }
 0x34e   : > { %v874_v30 = vpop.xlane.xlu0 %873 }
 0x34f   : > { %v875_v31 = vrot.slane %v874_v30, 4 }
 0x351   : > { %v876_v32 = vadd.f32 %v875_v31, %v874_v30 }
 0x353   : > { %v877_v33 = vrot.slane %v876_v32, 2 }
 0x355   : > { %v878_v34 = vadd.f32 %v877_v33, %v876_v32 }
 0x357   : > { %v879_v35 = vrot.slane %v878_v34, 1 }
 0x359   : > { %v880_v36 = vadd.f32 %v879_v35, %v878_v34 }
 0x35b   : > { %1197 = vpush %v880_v36 }
 0x38c   : > { %s1198_s20 = spop %1197 }
 0x38d   : > { %v882_v37 = vstv %s1198_s20 }
 0x38e   : > { %1232 = vrsqrt.f32 %v882_v37  ;;  %vm885_vm3 = vcmp.eq.f32.partialorder %v882_v37, inf  ;;  %v888_v40 = vand.u32 2147483648, %v882_v37  ;;  %vm887_vm4 = vcmp.eq.f32.partialorder %v882_v37, 0.0 }
 0x39b   : > { %v1233_v38 = vpop.eup %1232 }
 0x39c   : > { %v884_v39 = vmul.f32 %v1233_v38, %v882_v37 }
 0x39e   : > { %v886_v41 = vsel %vm885_vm3, %v882_v37, %v884_v39 }
 0x39f   : > { %v889_v42 = vsel %vm887_vm4, %v888_v40, %v886_v41 }
 0x3a0   : > { %1199 = vpush %v889_v42 }
 0x3d1   : > { %s1200_s23 = spop %1199 }
 0x3d2   : > { %v891_v43 = vstv %s1200_s23 }
 0x3d3   : > { %1234 = vrcp.f32 %v891_v43 }
 0x3d4   : > { %1236 = vlog2.f32 %v891_v43 }
 0x3e0   : > { %v1235_v44 = vpop.eup %1234 }
 0x3e1   : > { %v1237_v45 = vpop.eup %1236  ;;  %1201 = vpush %v1235_v44 }
 0x3e2   : > { %v906_v46 = vmul.f32 0.6931472, %v1237_v45 }
 0x3e4   : > { %1203 = vpush %v906_v46 }
 0x412   : > { %s1202_s24 = spop %1201 }
 0x413   : > { %v894_v47 = vstv %s1202_s24 }
 0x414   : > { %v895_v48 = vmul.f32 %v894_v47, %v858_v16  ;;  %v896_v49 = vmul.f32 %v894_v47, %v859_v11  ;;  %v897_v50 = vmul.f32 %v894_v47, %v860_v20  ;;  %v898_v51 = vmul.f32 %v894_v47, %v861_v17 }
 0x415   : > { %s1204_s25 = spop %1203  ;;  %915 = sbr.rel (%p1071_p5) target bundleno = 1462 (0x5b6), region = 52 }
 0x416   : > { %899 = vst.msk [vmem:[#allocation2] sm:$0xff] %vm316_vm2, %v895_v48  ;;  %900 = vst.msk [vmem:[#allocation2 + $0x8] sm:$0xff] %vm316_vm2, %v896_v49  ;;  %v908_v53 = vstv %s1204_s25 }
 0x417   : > { %901 = vst.msk [vmem:[#allocation2 + $0x10] sm:$0xff] %vm316_vm2, %v897_v50  ;;  %902 = vst.msk [vmem:[#allocation2 + $0x18] sm:$0xff] %vm316_vm2, %v898_v51  ;;  %v909_v54 = vadd.f32 %v908_v53, %v903_v52 }
 0x419   : > { %911 = vst.msk [vmem:[#allocation3] sm:$0x1] %vm910_vm5, %v909_v54 }
 0x41a   : > { %v922_v55 = vld [vmem:[%s1452_s5 + $0x10] sm:$0xff]  ;;  %v920_v56 = vld [vmem:[%s1452_s5] sm:$0xff]  ;;  %v1283_v57 = vmov 0   ;;  %v923_v58 = vld [vmem:[%s1452_s5 + $0x18] sm:$0xff] }
 0x41b   : > { %1239 = vset.pattern.permute.xlu1 %v1283_v57  ;;  %1238 = vset.pattern.permute.xlu0 %v1283_v57  ;;  %v921_v59 = vld [vmem:[%s1452_s5 + $0x8] sm:$0xff]  ;;  %v1072_v60 = vld [vmem:[%s1451_s4] ss:$0 sm:$0xff] }
 0x41c   : > { %937 = vperm.xlu1 %1239, %v922_v55   ;;  %927 = vperm.xlu0 %1238, %v920_v56  }
 0x41d   : > { %v916_v0 = vld [vmem:[#allocation2] sm:$0xff]  ;;  %v917_v5 = vld [vmem:[#allocation2 + $0x8] sm:$0xff] }
 0x41e   : > { %v918_v2 = vld [vmem:[#allocation2 + $0x10] sm:$0xff]  ;;  %v919_v9 = vld [vmem:[#allocation2 + $0x18] sm:$0xff] }
 0x420   : > { %942 = vperm.xlu1 %1239, %v923_v58   ;;  %932 = vperm.xlu0 %1238, %v921_v59   ;;  %v975_v30 = vld [vmem:[#allocation3] sm:$0x1] }
 0x497   : > { %v938_v61 = vpop.permute.xlu1 %937  ;;  %v928_v62 = vpop.permute.xlu0 %927 }
 0x498   : > { %v951_v63 = vmul.f32 %v1072_v60, %v928_v62  ;;  %v953_v1 = vmul.f32 %v1072_v60, %v938_v61 }
 0x49a   : > { %v955_v6 = vmul.f32 %v951_v63, %v916_v0  ;;  %v957_v10 = vmul.f32 %v953_v1, %v918_v2 }
 0x49b   : > { %v943_v3 = vpop.permute.xlu1 %942  ;;  %v933_v4 = vpop.permute.xlu0 %932 }
 0x49c   : > { %v954_v7 = vmul.f32 %v1072_v60, %v943_v3  ;;  %v952_v8 = vmul.f32 %v1072_v60, %v933_v4  ;;  %v959_v12 = vsel %vm316_vm2, %v955_v6, 0.0  ;;  %v962_v16 = vsel %vm316_vm2, %v957_v10, 0.0 }
 0x49e   : > { %v956_v11 = vmul.f32 %v952_v8, %v917_v5  ;;  %v958_v13 = vmul.f32 %v954_v7, %v919_v9 }
 0x4a0   : > { %v960_v14 = vsel %vm316_vm2, %v956_v11, 0.0  ;;  %v964_v18 = vsel %vm316_vm2, %v958_v13, 0.0 }
 0x4a1   : > { %v961_v15 = vadd.f32 %v960_v14, %v959_v12 }
 0x4a3   : > { %v963_v17 = vadd.f32 %v962_v16, %v961_v15 }
 0x4a5   : > { %v965_v19 = vadd.f32 %v964_v18, %v963_v17 }
 0x4a7   : > { %966 = vadd.xlane.f32.xlu0 %v965_v19 }
 0x530   : > { %v967_v20 = vpop.xlane.xlu0 %966 }
 0x531   : > { %v968_v21 = vrot.slane %v967_v20, 4 }
 0x533   : > { %v969_v22 = vadd.f32 %v968_v21, %v967_v20 }
 0x535   : > { %v970_v23 = vrot.slane %v969_v22, 2 }
 0x537   : > { %v971_v24 = vadd.f32 %v970_v23, %v969_v22 }
 0x539   : > { %v972_v25 = vrot.slane %v971_v24, 1 }
 0x53b   : > { %v973_v26 = vadd.f32 %v972_v25, %v971_v24 }
 0x53d   : > { %1205 = vpush %v973_v26 }
 0x56e   : > { %s1206_s12 = spop %1205 }
 0x56f   : > { %v976_v27 = vstv %s1206_s12 }
 0x570   : > { %1240 = vlog2.f32 %v976_v27 }
 0x57d   : > { %v1241_v28 = vpop.eup %1240 }
 0x57e   : > { %v978_v29 = vmul.f32 0.6931472, %v1241_v28 }
 0x580   : > { %1207 = vpush %v978_v29 }
 0x5b1   : > { %s1208_s13 = spop %1207 }
 0x5b2   : > { %v980_v31 = vstv %s1208_s13 }
 0x5b3   : > { %v981_v32 = vadd.f32 %v980_v31, %v975_v30 }
 0x5b5   : > { %982 = vst.msk [vmem:[#allocation4] sm:$0x1] %vm910_vm5, %v981_v32 }
 0x5b6 PF: > { %p1213_p6 = scmp.eq.s32.totalorder %s1326_s22, 7  ;;  %s1284_s14 = smov [#allocation4]  }
 0x5b7   : > { %s990_s15 = sshll.u32 %s1284_s14, 4  ;;  %s991_s15 = int_to_ptr.vmem [resolvable:$true] %s990_s15 }
 0x5b8   : > { %s1242_s16 = scalar_lea.vmem %s991_s15, 16  ;;  %s1248_s17 = scalar_lea.vmem %s991_s15, 32 }
 0x5b9   : > { %p1243_p7 = scmp.ne.s32.totalorder %s991_s15, %s1242_s16  ;;  %p1249_p10 = scmp.lt.s32.totalorder %s991_s15, %s991_s15 }
 0x5ba   : > { %p1250_p11 = scmp.lt.s32.totalorder %s1248_s17, %s1242_s16 }
 0x5bb   : > { %p1244_p8 = pnand %p1243_p7, %p1213_p6 }
 0x5bc   : > { %p1251_p12 = por %p1250_p11, %p1249_p10 }
 0x5bd   : > { %p1245_p9 = pneg %p1244_p8 }
 0x5bf   : > { %p1252_p13 = pnand %p1251_p12, %p1245_p9 }
 0x5c1   : > { %1255 = shalt.err (!%p1252_p13)
}
 0x5c2   : > { %1210 = dma.vmem_to_hbm [thread:$0]  (%p1213_p6), %s991_s15, 16, %s1453_s6, [#allocation5]  }
 0x5c3   : > { %1271 = dma.done.wait (%p1213_p6), [#allocation5], 16  }
 0x5c4   : > { %1273 = vsyncadd (%p1213_p6), [#allocation5], 4294967280 }
 0x5c5 PF: > { %s17_s21 = sadd.s32 1, %s1276_s21  }
 0x5c6   : > { %p14_p0 = scmp.ge.s32.totalorder %s17_s21, 10  }
 0x5c8   :  { %16 = sbr.rel (!%p14_p0) target bundleno = 1 (0x1), region = 82 }
 0x5cd   :  { %1003 = vsyncpa [#allocation5], 1 }
 0x5ce   :  { %1005 = vsyncpa [#allocation5 + $0x1], 1 }

// kernel: probmps_log_prob.3
= control target key start
LH: loop header
LB: loop body
LE: loop exit
PB: predicated region body
PF: predicated region fallthrough
CT: control target
= control target key end

     0   :  { %v1843_v0 = vmov 0   ;;  %v50_v10 = vlaneseq  ;;  %s2232_s2 = inlined_call_operand.vmem [shape: f32[32,1], index: 2, kind: input, shape index: {}]   ;;  %s2233_s3 = inlined_call_operand.vmem [shape: f32[32,1], index: 3, kind: input, shape index: {}]   ;;  %s2234_s1 = inlined_call_operand.vmem [shape: f32[8,32,128], index: 1, kind: input, shape index: {}]   ;;  %s2235_s0 = inlined_call_operand.vmem [shape: s32[8,1,128], index: 0, kind: input, shape index: {}]   ;;  %s2236_s4 = inlined_call_operand.vmem [shape: f32[1,1,128], index: 4, kind: output, shape index: {}]  }
   0x1   :  { %1840 = vset.pattern.permute.xlu1 %v1843_v0  ;;  %49 = vst [vmem:[#allocation3] sm:$0x1] %v1843_v0  ;;  %1839 = vset.pattern.permute.xlu0 %v1843_v0  ;;  %v24_v1 = vld [vmem:[%s2232_s2 + $0x18] sm:$0xff]  ;;  %v22_v2 = vld [vmem:[%s2232_s2 + $0x8] sm:$0xff]  ;;  %v23_v3 = vld [vmem:[%s2232_s2 + $0x10] sm:$0xff] }
   0x2   :  { %42 = vperm.xlu0 %1839, %v24_v1   ;;  %32 = vperm.xlu1 %1840, %v22_v2   ;;  %v21_v4 = vld [vmem:[%s2232_s2] sm:$0xff]  ;;  %v1149_v6 = vld [vmem:[%s2233_s3 + $0x8] sm:$0xff]  ;;  %v1150_v7 = vld [vmem:[%s2233_s3 + $0x10] sm:$0xff]  ;;  %v1896_v11 = vshrl.u32 %v50_v10, 7 }
   0x3   :  { %v1148_v5 = vld [vmem:[%s2233_s3] sm:$0xff]  ;;  %v1151_v8 = vld [vmem:[%s2233_s3 + $0x18] sm:$0xff]  ;;  %v125_v48 = vld [vmem:[%s2234_s1 + $0x8] sm:$0xff] }
   0x4   :  { %v124_v9 = vld [vmem:[%s2234_s1] sm:$0xff]  ;;  %v66_v12 = vadd.s32 120, %v1896_v11  ;;  %v65_v14 = vadd.s32 112, %v1896_v11  ;;  %v64_v16 = vadd.s32 104, %v1896_v11  ;;  %v63_v18 = vadd.s32 96, %v1896_v11  ;;  %v126_v49 = vld [vmem:[%s2234_s1 + $0x10] sm:$0xff] }
   0x5   :  { %1566 = vmatprep.mubr.f32.mxu0 %v124_v9  ;;  %v1905_v15 = vld [vmem:[%s2235_s0] ss:$0 sm:$0xff]  ;;  %v62_v21 = vadd.s32 88, %v1896_v11  ;;  %v61_v24 = vadd.s32 80, %v1896_v11  ;;  %v60_v27 = vadd.s32 72, %v1896_v11  ;;  %v59_v29 = vadd.s32 64, %v1896_v11 }
   0x6   :  { %37 = vperm.xlu0 %1839, %v23_v3   ;;  %27 = vperm.xlu1 %1840, %v21_v4   ;;  %v1899_v13 = vshra.s32 %v66_v12, 5  ;;  %v1910_v17 = vshra.s32 %v65_v14, 5  ;;  %v1915_v20 = vshra.s32 %v64_v16, 5  ;;  %v1924_v23 = vshra.s32 %v63_v18, 5  ;;  %v127_v50 = vld [vmem:[%s2234_s1 + $0x18] sm:$0xff]  ;;  %v1221_v51 = vld [vmem:[%s2234_s1 + $0x20] sm:$0xff] }
   0x7   :  { %v1929_v26 = vshra.s32 %v62_v21, 5  ;;  %v1934_v28 = vshra.s32 %v61_v24, 5  ;;  %v1941_v31 = vshra.s32 %v60_v27, 5  ;;  %v58_v32 = vadd.s32 56, %v1896_v11  ;;  %1604 = vmatprep.mubr.f32.mxu1 %v1221_v51  ;;  %v1220_v52 = vld [vmem:[%s2235_s0 + $0x1] ss:$0 sm:$0xff] }
   0x8   :  { %vm107_vm0 = vcmp.eq.s32.totalorder %v1899_v13, %v1905_v15  ;;  %vm106_vm1 = vcmp.eq.s32.totalorder %v1910_v17, %v1905_v15  ;;  %vm105_vm2 = vcmp.eq.s32.totalorder %v1915_v20, %v1905_v15  ;;  %vm104_vm3 = vcmp.eq.s32.totalorder %v1924_v23, %v1905_v15  ;;  %v1222_v57 = vld [vmem:[%s2234_s1 + $0x28] sm:$0xff]  ;;  %v1223_v58 = vld [vmem:[%s2234_s1 + $0x30] sm:$0xff]  ;;  %v1224_v59 = vld [vmem:[%s2234_s1 + $0x38] sm:$0xff] }
   0x9   :  { %vm103_vm4 = vcmp.eq.s32.totalorder %v1929_v26, %v1905_v15  ;;  %vm102_vm5 = vcmp.eq.s32.totalorder %v1934_v28, %v1905_v15  ;;  %v1946_v33 = vshra.s32 %v59_v29, 5  ;;  %v57_v34 = vadd.s32 48, %v1896_v11  ;;  %v1243_v60 = vld [vmem:[%s2234_s1 + $0x40] sm:$0xff]  ;;  %v1244_v2 = vld [vmem:[%s2234_s1 + $0x48] sm:$0xff]  ;;  %v1245_v3 = vld [vmem:[%s2234_s1 + $0x50] sm:$0xff] }
   0xa   :  { %1158 = vperm.xlu0 %1839, %v1148_v5   ;;  %1163 = vperm.xlu1 %1840, %v1149_v6   ;;  %vm101_vm6 = vcmp.eq.s32.totalorder %v1941_v31, %v1905_v15  ;;  %v1953_v35 = vshra.s32 %v58_v32, 5  ;;  %v56_v36 = vadd.s32 40, %v1896_v11  ;;  %v55_v38 = vadd.s32 32, %v1896_v11  ;;  %v1242_v61 = vld [vmem:[%s2235_s0 + $0x2] ss:$0 sm:$0xff]  ;;  %v1246_v4 = vld [vmem:[%s2234_s1 + $0x58] sm:$0xff] }
   0xb   :  { %vm100_vm7 = vcmp.eq.s32.totalorder %v1946_v33, %v1905_v15  ;;  %v1958_v37 = vshra.s32 %v57_v34, 5  ;;  %v54_v40 = vadd.s32 24, %v1896_v11  ;;  %v53_v42 = vadd.s32 16, %v1896_v11  ;;  %v1265_v5 = vld [vmem:[%s2234_s1 + $0x60] sm:$0xff]  ;;  %v1267_v12 = vld [vmem:[%s2234_s1 + $0x70] sm:$0xff]  ;;  %v1268_v14 = vld [vmem:[%s2234_s1 + $0x78] sm:$0xff] }
   0xc   :  { %vm99_vm8 = vcmp.eq.s32.totalorder %v1953_v35, %v1905_v15  ;;  %v1965_v39 = vshra.s32 %v56_v36, 5  ;;  %v1970_v41 = vshra.s32 %v55_v38, 5  ;;  %v52_v44 = vadd.s32 8, %v1896_v11  ;;  %v1264_v6 = vld [vmem:[%s2235_s0 + $0x3] ss:$0 sm:$0xff]  ;;  %v1288_v24 = vld [vmem:[%s2234_s1 + $0x88] sm:$0xff] }
   0xd   :  { %vm98_vm9 = vcmp.eq.s32.totalorder %v1958_v37, %v1905_v15  ;;  %v1977_v43 = vshra.s32 %v54_v40, 5  ;;  %v1982_v45 = vshra.s32 %v53_v42, 5  ;;  %v1993_v47 = vshra.s32 %v1896_v11, 5  ;;  %v1266_v11 = vld [vmem:[%s2234_s1 + $0x68] sm:$0xff]  ;;  %v1286_v16 = vld [vmem:[%s2235_s0 + $0x4] ss:$0 sm:$0xff] }
   0xe   :  { %1168 = vperm.xlu0 %1839, %v1150_v7   ;;  %1173 = vperm.xlu1 %1840, %v1151_v8   ;;  %vm97_vm10 = vcmp.eq.s32.totalorder %v1965_v39, %v1905_v15  ;;  %vm96_vm11 = vcmp.eq.s32.totalorder %v1970_v41, %v1905_v15  ;;  %v1988_v46 = vshra.s32 %v52_v44, 5  ;;  %v1290_v27 = vld [vmem:[%s2234_s1 + $0x98] sm:$0xff]  ;;  %v1309_v29 = vld [vmem:[%s2234_s1 + $0xa0] sm:$0xff]  ;;  %v1310_v40 = vld [vmem:[%s2234_s1 + $0xa8] sm:$0xff] }
   0xf   :  { %vm95_vm12 = vcmp.eq.s32.totalorder %v1977_v43, %v1905_v15  ;;  %vm94_vm13 = vcmp.eq.s32.totalorder %v1982_v45, %v1905_v15  ;;  %vm92_vm15 = vcmp.eq.s32.totalorder %v1993_v47, %v1905_v15  ;;  %v1311_v42 = vld [vmem:[%s2234_s1 + $0xb0] sm:$0xff]  ;;  %v1312_v44 = vld [vmem:[%s2234_s1 + $0xb8] sm:$0xff] }
  0x10   :  { %vm93_vm14 = vcmp.eq.s32.totalorder %v1988_v46, %v1905_v15  ;;  %v1287_v15 = vld [vmem:[%s2234_s1 + $0x80] sm:$0xff] }
  0x7d   :  { %v1913_v19 = vpop.permute.xlu0 %42  ;;  %v1919_v22 = vpop.permute.xlu1 %32 }
  0x7e   :  { %1534 = vmatprep.subr.msk.mxu0 %vm107_vm0, %v1913_v19 }
  0x7f   :  { %1535 = vmatpush3.msk.msra.mxu0 %vm107_vm0, %v1913_v19  ;;  %vm234_vm0 = vcmp.eq.s32.totalorder %v1899_v13, %v1220_v52 }
  0x81   :  { %v38_v25 = vpop.permute.xlu0 %37  ;;  %v28_v30 = vpop.permute.xlu1 %27 }
  0x82   :  { %1536 = vmatprep.subr.msk.mxu0 %vm106_vm1, %v38_v25 }
  0x83   :  { %1537 = vmatpush3.msk.msra.mxu0 %vm106_vm1, %v38_v25  ;;  %vm233_vm1 = vcmp.eq.s32.totalorder %v1910_v17, %v1220_v52 }
  0x84   :  { %1538 = vmatprep.subr.msk.mxu0 %vm105_vm2, %v1919_v22 }
  0x85   :  { %1539 = vmatpush3.msk.msra.mxu0 %vm105_vm2, %v1919_v22  ;;  %vm232_vm2 = vcmp.eq.s32.totalorder %v1915_v20, %v1220_v52 }
  0x86   :  { %1540 = vmatprep.subr.msk.mxu0 %vm104_vm3, %v28_v30 }
  0x87   :  { %1541 = vmatpush3.msk.msra.mxu0 %vm104_vm3, %v28_v30  ;;  %vm231_vm3 = vcmp.eq.s32.totalorder %v1924_v23, %v1220_v52 }
  0x88   :  { %1542 = vmatprep.subr.msk.mxu0 %vm103_vm4, %v1913_v19 }
  0x89   :  { %1543 = vmatpush3.msk.msra.mxu0 %vm103_vm4, %v1913_v19  ;;  %vm230_vm4 = vcmp.eq.s32.totalorder %v1929_v26, %v1220_v52 }
  0x8a   :  { %1544 = vmatprep.subr.msk.mxu0 %vm102_vm5, %v38_v25 }
  0x8b   :  { %1545 = vmatpush3.msk.msra.mxu0 %vm102_vm5, %v38_v25  ;;  %vm229_vm5 = vcmp.eq.s32.totalorder %v1934_v28, %v1220_v52 }
  0x8c   :  { %1546 = vmatprep.subr.msk.mxu0 %vm101_vm6, %v1919_v22 }
  0x8d   :  { %1547 = vmatpush3.msk.msra.mxu0 %vm101_vm6, %v1919_v22  ;;  %vm228_vm6 = vcmp.eq.s32.totalorder %v1941_v31, %v1220_v52 }
  0x8e   :  { %1548 = vmatprep.subr.msk.mxu0 %vm100_vm7, %v28_v30 }
  0x8f   :  { %1549 = vmatpush3.msk.msra.mxu0 %vm100_vm7, %v28_v30  ;;  %vm227_vm7 = vcmp.eq.s32.totalorder %v1946_v33, %v1220_v52 }
  0x90   :  { %1550 = vmatprep.subr.msk.mxu0 %vm99_vm8, %v1913_v19 }
  0x91   :  { %1551 = vmatpush3.msk.msra.mxu0 %vm99_vm8, %v1913_v19  ;;  %vm226_vm8 = vcmp.eq.s32.totalorder %v1953_v35, %v1220_v52 }
  0x92   :  { %1552 = vmatprep.subr.msk.mxu0 %vm98_vm9, %v38_v25 }
  0x93   :  { %1553 = vmatpush3.msk.msra.mxu0 %vm98_vm9, %v38_v25  ;;  %vm225_vm9 = vcmp.eq.s32.totalorder %v1958_v37, %v1220_v52 }
  0x94   :  { %1554 = vmatprep.subr.msk.mxu0 %vm97_vm10, %v1919_v22 }
  0x95   :  { %1555 = vmatpush3.msk.msra.mxu0 %vm97_vm10, %v1919_v22  ;;  %vm224_vm10 = vcmp.eq.s32.totalorder %v1965_v39, %v1220_v52 }
  0x96   :  { %1556 = vmatprep.subr.msk.mxu0 %vm96_vm11, %v28_v30 }
  0x97   :  { %1557 = vmatpush3.msk.msra.mxu0 %vm96_vm11, %v28_v30  ;;  %vm223_vm11 = vcmp.eq.s32.totalorder %v1970_v41, %v1220_v52 }
  0x98   :  { %1558 = vmatprep.subr.msk.mxu0 %vm95_vm12, %v1913_v19 }
  0x99   :  { %1559 = vmatpush3.msk.msra.mxu0 %vm95_vm12, %v1913_v19  ;;  %vm222_vm12 = vcmp.eq.s32.totalorder %v1977_v43, %v1220_v52 }
  0x9a   :  { %1560 = vmatprep.subr.msk.mxu0 %vm94_vm13, %v38_v25 }
  0x9b   :  { %1561 = vmatpush3.msk.msra.mxu0 %vm94_vm13, %v38_v25  ;;  %vm221_vm13 = vcmp.eq.s32.totalorder %v1982_v45, %v1220_v52  ;;  %v1289_v25 = vld [vmem:[%s2234_s1 + $0x90] sm:$0xff] }
  0x9c   :  { %1562 = vmatprep.subr.msk.mxu0 %vm93_vm14, %v1919_v22 }
  0x9d   :  { %1563 = vmatpush3.msk.msra.mxu0 %vm93_vm14, %v1919_v22  ;;  %vm220_vm14 = vcmp.eq.s32.totalorder %v1988_v46, %v1220_v52 }
  0x9e   :  { %1564 = vmatprep.subr.msk.mxu0 %vm92_vm15, %v28_v30 }
  0x9f   :  { %1565 = vmatpush3.msk.msra.mxu0 %vm92_vm15, %v28_v30  ;;  %vm219_vm15 = vcmp.eq.s32.totalorder %v1993_v47, %v1220_v52  ;;  %v1308_v30 = vld [vmem:[%s2235_s0 + $0x5] ss:$0 sm:$0xff] }
  0xa0   :  { %1567 = vmatmul.mubr.f32.vlgmr.msra.gmra.mxu0 %v125_v48  ;;  %v1331_v48 = vld [vmem:[%s2234_s1 + $0xc0] sm:$0xff] }
  0xa1   :  { %1569 = vmatprep.mubr.f32.mxu0 %v126_v49  ;;  %v1330_v49 = vld [vmem:[%s2235_s0 + $0x6] ss:$0 sm:$0xff] }
  0xa4   :  { %1570 = vmatmul.mubr.f32.gmra.mxu0 %v127_v50 }
  0xa5   :  { %1642 = vmatprep.mubr.f32.mxu0 %v1243_v60 }
 0x160   :  { %v1568_v53 = vpop.f32.mrf.mxu0 }
 0x162   :  { %v194_v54 = vpop.f32.mrf.mxu0 }
 0x164   :  { %v1571_v55 = vpop.f32.mrf.mxu0 }
 0x165   :  { %1572 = vmatprep.subr.msk.mxu1 %vm234_vm0, %v1571_v55 }
 0x166   :  { %v204_v56 = vpop.f32.mrf.mxu0  ;;  %1573 = vmatpush3.msk.msra.mxu1 %vm234_vm0, %v1571_v55  ;;  %vm362_vm0 = vcmp.eq.s32.totalorder %v1899_v13, %v1242_v61 }
 0x167   :  { %1574 = vmatprep.subr.msk.mxu1 %vm233_vm1, %v204_v56 }
 0x168   :  { %1575 = vmatpush3.msk.msra.mxu1 %vm233_vm1, %v204_v56  ;;  %vm361_vm1 = vcmp.eq.s32.totalorder %v1910_v17, %v1242_v61 }
 0x169   :  { %1576 = vmatprep.subr.msk.mxu1 %vm232_vm2, %v1568_v53 }
 0x16a   :  { %1577 = vmatpush3.msk.msra.mxu1 %vm232_vm2, %v1568_v53  ;;  %vm360_vm2 = vcmp.eq.s32.totalorder %v1915_v20, %v1242_v61 }
 0x16b   :  { %1578 = vmatprep.subr.msk.mxu1 %vm231_vm3, %v194_v54 }
 0x16c   :  { %1579 = vmatpush3.msk.msra.mxu1 %vm231_vm3, %v194_v54  ;;  %vm359_vm3 = vcmp.eq.s32.totalorder %v1924_v23, %v1242_v61 }
 0x16d   :  { %1580 = vmatprep.subr.msk.mxu1 %vm230_vm4, %v1571_v55 }
 0x16e   :  { %1581 = vmatpush3.msk.msra.mxu1 %vm230_vm4, %v1571_v55  ;;  %vm358_vm4 = vcmp.eq.s32.totalorder %v1929_v26, %v1242_v61 }
 0x16f   :  { %1582 = vmatprep.subr.msk.mxu1 %vm229_vm5, %v204_v56 }
 0x170   :  { %1583 = vmatpush3.msk.msra.mxu1 %vm229_vm5, %v204_v56  ;;  %vm357_vm5 = vcmp.eq.s32.totalorder %v1934_v28, %v1242_v61 }
 0x171   :  { %1584 = vmatprep.subr.msk.mxu1 %vm228_vm6, %v1568_v53 }
 0x172   :  { %1585 = vmatpush3.msk.msra.mxu1 %vm228_vm6, %v1568_v53  ;;  %vm356_vm6 = vcmp.eq.s32.totalorder %v1941_v31, %v1242_v61 }
 0x173   :  { %1586 = vmatprep.subr.msk.mxu1 %vm227_vm7, %v194_v54 }
 0x174   :  { %1587 = vmatpush3.msk.msra.mxu1 %vm227_vm7, %v194_v54  ;;  %vm355_vm7 = vcmp.eq.s32.totalorder %v1946_v33, %v1242_v61 }
 0x175   :  { %1588 = vmatprep.subr.msk.mxu1 %vm226_vm8, %v1571_v55 }
 0x176   :  { %1589 = vmatpush3.msk.msra.mxu1 %vm226_vm8, %v1571_v55  ;;  %vm354_vm8 = vcmp.eq.s32.totalorder %v1953_v35, %v1242_v61 }
 0x177   :  { %1590 = vmatprep.subr.msk.mxu1 %vm225_vm9, %v204_v56 }
 0x178   :  { %1591 = vmatpush3.msk.msra.mxu1 %vm225_vm9, %v204_v56  ;;  %vm353_vm9 = vcmp.eq.s32.totalorder %v1958_v37, %v1242_v61 }
 0x179   :  { %1592 = vmatprep.subr.msk.mxu1 %vm224_vm10, %v1568_v53 }
 0x17a   :  { %1593 = vmatpush3.msk.msra.mxu1 %vm224_vm10, %v1568_v53  ;;  %vm352_vm10 = vcmp.eq.s32.totalorder %v1965_v39, %v1242_v61 }
 0x17b   :  { %1594 = vmatprep.subr.msk.mxu1 %vm223_vm11, %v194_v54 }
 0x17c   :  { %1595 = vmatpush3.msk.msra.mxu1 %vm223_vm11, %v194_v54  ;;  %vm351_vm11 = vcmp.eq.s32.totalorder %v1970_v41, %v1242_v61 }
 0x17d   :  { %1596 = vmatprep.subr.msk.mxu1 %vm222_vm12, %v1571_v55 }
 0x17e   :  { %1597 = vmatpush3.msk.msra.mxu1 %vm222_vm12, %v1571_v55  ;;  %vm350_vm12 = vcmp.eq.s32.totalorder %v1977_v43, %v1242_v61  ;;  %v1333_v55 = vld [vmem:[%s2234_s1 + $0xd0] sm:$0xff] }
 0x17f   :  { %1598 = vmatprep.subr.msk.mxu1 %vm221_vm13, %v204_v56 }
 0x180   :  { %1599 = vmatpush3.msk.msra.mxu1 %vm221_vm13, %v204_v56  ;;  %vm349_vm13 = vcmp.eq.s32.totalorder %v1982_v45, %v1242_v61  ;;  %v1334_v56 = vld [vmem:[%s2234_s1 + $0xd8] sm:$0xff] }
 0x181   :  { %1600 = vmatprep.subr.msk.mxu1 %vm220_vm14, %v1568_v53 }
 0x182   :  { %1601 = vmatpush3.msk.msra.mxu1 %vm220_vm14, %v1568_v53  ;;  %vm348_vm14 = vcmp.eq.s32.totalorder %v1988_v46, %v1242_v61 }
 0x183   :  { %1602 = vmatprep.subr.msk.mxu1 %vm219_vm15, %v194_v54 }
 0x184   :  { %1603 = vmatpush3.msk.msra.mxu1 %vm219_vm15, %v194_v54  ;;  %vm347_vm15 = vcmp.eq.s32.totalorder %v1993_v47, %v1242_v61  ;;  %v1332_v54 = vld [vmem:[%s2234_s1 + $0xc8] sm:$0xff] }
 0x185   :  { %1605 = vmatmul.mubr.f32.vlgmr.msra.gmra.mxu1 %v1222_v57  ;;  %v1353_v57 = vld [vmem:[%s2234_s1 + $0xe0] sm:$0xff] }
 0x186   :  { %1607 = vmatprep.mubr.f32.mxu1 %v1223_v58  ;;  %v1352_v58 = vld [vmem:[%s2235_s0 + $0x7] ss:$0 sm:$0xff] }
 0x189   :  { %1608 = vmatmul.mubr.f32.gmra.mxu1 %v1224_v59 }
 0x18a   :  { %1680 = vmatprep.mubr.f32.mxu1 %v1265_v5 }
 0x245   :  { %v1606_v62 = vpop.f32.mrf.mxu1 }
 0x247   :  { %v322_v63 = vpop.f32.mrf.mxu1 }
 0x249   :  { %v1609_v0 = vpop.f32.mrf.mxu1 }
 0x24a   :  { %1610 = vmatprep.subr.msk.mxu0 %vm362_vm0, %v1609_v0 }
 0x24b   :  { %v332_v1 = vpop.f32.mrf.mxu1  ;;  %1611 = vmatpush3.msk.msra.mxu0 %vm362_vm0, %v1609_v0  ;;  %vm490_vm0 = vcmp.eq.s32.totalorder %v1899_v13, %v1264_v6 }
 0x24c   :  { %1612 = vmatprep.subr.msk.mxu0 %vm361_vm1, %v332_v1 }
 0x24d   :  { %1613 = vmatpush3.msk.msra.mxu0 %vm361_vm1, %v332_v1  ;;  %vm489_vm1 = vcmp.eq.s32.totalorder %v1910_v17, %v1264_v6 }
 0x24e   :  { %1614 = vmatprep.subr.msk.mxu0 %vm360_vm2, %v1606_v62 }
 0x24f   :  { %1615 = vmatpush3.msk.msra.mxu0 %vm360_vm2, %v1606_v62  ;;  %vm488_vm2 = vcmp.eq.s32.totalorder %v1915_v20, %v1264_v6 }
 0x250   :  { %1616 = vmatprep.subr.msk.mxu0 %vm359_vm3, %v322_v63 }
 0x251   :  { %1617 = vmatpush3.msk.msra.mxu0 %vm359_vm3, %v322_v63  ;;  %vm487_vm3 = vcmp.eq.s32.totalorder %v1924_v23, %v1264_v6 }
 0x252   :  { %1618 = vmatprep.subr.msk.mxu0 %vm358_vm4, %v1609_v0 }
 0x253   :  { %1619 = vmatpush3.msk.msra.mxu0 %vm358_vm4, %v1609_v0  ;;  %vm486_vm4 = vcmp.eq.s32.totalorder %v1929_v26, %v1264_v6 }
 0x254   :  { %1620 = vmatprep.subr.msk.mxu0 %vm357_vm5, %v332_v1 }
 0x255   :  { %1621 = vmatpush3.msk.msra.mxu0 %vm357_vm5, %v332_v1  ;;  %vm485_vm5 = vcmp.eq.s32.totalorder %v1934_v28, %v1264_v6 }
 0x256   :  { %1622 = vmatprep.subr.msk.mxu0 %vm356_vm6, %v1606_v62 }
 0x257   :  { %1623 = vmatpush3.msk.msra.mxu0 %vm356_vm6, %v1606_v62  ;;  %vm484_vm6 = vcmp.eq.s32.totalorder %v1941_v31, %v1264_v6 }
 0x258   :  { %1624 = vmatprep.subr.msk.mxu0 %vm355_vm7, %v322_v63 }
 0x259   :  { %1625 = vmatpush3.msk.msra.mxu0 %vm355_vm7, %v322_v63  ;;  %vm483_vm7 = vcmp.eq.s32.totalorder %v1946_v33, %v1264_v6 }
 0x25a   :  { %1626 = vmatprep.subr.msk.mxu0 %vm354_vm8, %v1609_v0 }
 0x25b   :  { %1627 = vmatpush3.msk.msra.mxu0 %vm354_vm8, %v1609_v0  ;;  %vm482_vm8 = vcmp.eq.s32.totalorder %v1953_v35, %v1264_v6 }
 0x25c   :  { %1628 = vmatprep.subr.msk.mxu0 %vm353_vm9, %v332_v1 }
 0x25d   :  { %1629 = vmatpush3.msk.msra.mxu0 %vm353_vm9, %v332_v1  ;;  %vm481_vm9 = vcmp.eq.s32.totalorder %v1958_v37, %v1264_v6 }
 0x25e   :  { %1630 = vmatprep.subr.msk.mxu0 %vm352_vm10, %v1606_v62 }
 0x25f   :  { %1631 = vmatpush3.msk.msra.mxu0 %vm352_vm10, %v1606_v62  ;;  %vm480_vm10 = vcmp.eq.s32.totalorder %v1965_v39, %v1264_v6 }
 0x260   :  { %1632 = vmatprep.subr.msk.mxu0 %vm351_vm11, %v322_v63 }
 0x261   :  { %1633 = vmatpush3.msk.msra.mxu0 %vm351_vm11, %v322_v63  ;;  %vm479_vm11 = vcmp.eq.s32.totalorder %v1970_v41, %v1264_v6 }
 0x262   :  { %1634 = vmatprep.subr.msk.mxu0 %vm350_vm12, %v1609_v0 }
 0x263   :  { %1635 = vmatpush3.msk.msra.mxu0 %vm350_vm12, %v1609_v0  ;;  %vm478_vm12 = vcmp.eq.s32.totalorder %v1977_v43, %v1264_v6 }
 0x264   :  { %1636 = vmatprep.subr.msk.mxu0 %vm349_vm13, %v332_v1 }
 0x265   :  { %1637 = vmatpush3.msk.msra.mxu0 %vm349_vm13, %v332_v1  ;;  %vm477_vm13 = vcmp.eq.s32.totalorder %v1982_v45, %v1264_v6 }
 0x266   :  { %1638 = vmatprep.subr.msk.mxu0 %vm348_vm14, %v1606_v62 }
 0x267   :  { %1639 = vmatpush3.msk.msra.mxu0 %vm348_vm14, %v1606_v62  ;;  %vm476_vm14 = vcmp.eq.s32.totalorder %v1988_v46, %v1264_v6 }
 0x268   :  { %1640 = vmatprep.subr.msk.mxu0 %vm347_vm15, %v322_v63 }
 0x269   :  { %1641 = vmatpush3.msk.msra.mxu0 %vm347_vm15, %v322_v63  ;;  %vm475_vm15 = vcmp.eq.s32.totalorder %v1993_v47, %v1264_v6  ;;  %v1142_v6 = vld [vmem:[#allocation3] sm:$0x1] }
 0x26a   :  { %1643 = vmatmul.mubr.f32.vlgmr.msra.gmra.mxu0 %v1244_v2 }
 0x26b   :  { %1645 = vmatprep.mubr.f32.mxu0 %v1245_v3 }
 0x26e   :  { %1646 = vmatmul.mubr.f32.gmra.mxu0 %v1246_v4 }
 0x26f   :  { %1718 = vmatprep.mubr.f32.mxu0 %v1287_v15 }
 0x32a   :  { %v1644_v7 = vpop.f32.mrf.mxu0 }
 0x32c   :  { %v450_v8 = vpop.f32.mrf.mxu0 }
 0x32e   :  { %v1647_v9 = vpop.f32.mrf.mxu0 }
 0x32f   :  { %1648 = vmatprep.subr.msk.mxu1 %vm490_vm0, %v1647_v9 }
 0x330   :  { %v460_v10 = vpop.f32.mrf.mxu0  ;;  %1649 = vmatpush3.msk.msra.mxu1 %vm490_vm0, %v1647_v9  ;;  %vm618_vm0 = vcmp.eq.s32.totalorder %v1899_v13, %v1286_v16 }
 0x331   :  { %1650 = vmatprep.subr.msk.mxu1 %vm489_vm1, %v460_v10 }
 0x332   :  { %1651 = vmatpush3.msk.msra.mxu1 %vm489_vm1, %v460_v10  ;;  %vm617_vm1 = vcmp.eq.s32.totalorder %v1910_v17, %v1286_v16 }
 0x333   :  { %1652 = vmatprep.subr.msk.mxu1 %vm488_vm2, %v1644_v7 }
 0x334   :  { %1653 = vmatpush3.msk.msra.mxu1 %vm488_vm2, %v1644_v7  ;;  %vm616_vm2 = vcmp.eq.s32.totalorder %v1915_v20, %v1286_v16 }
 0x335   :  { %1654 = vmatprep.subr.msk.mxu1 %vm487_vm3, %v450_v8 }
 0x336   :  { %1655 = vmatpush3.msk.msra.mxu1 %vm487_vm3, %v450_v8  ;;  %vm615_vm3 = vcmp.eq.s32.totalorder %v1924_v23, %v1286_v16 }
 0x337   :  { %1656 = vmatprep.subr.msk.mxu1 %vm486_vm4, %v1647_v9 }
 0x338   :  { %1657 = vmatpush3.msk.msra.mxu1 %vm486_vm4, %v1647_v9  ;;  %vm614_vm4 = vcmp.eq.s32.totalorder %v1929_v26, %v1286_v16 }
 0x339   :  { %1658 = vmatprep.subr.msk.mxu1 %vm485_vm5, %v460_v10 }
 0x33a   :  { %1659 = vmatpush3.msk.msra.mxu1 %vm485_vm5, %v460_v10  ;;  %vm613_vm5 = vcmp.eq.s32.totalorder %v1934_v28, %v1286_v16 }
 0x33b   :  { %1660 = vmatprep.subr.msk.mxu1 %vm484_vm6, %v1644_v7 }
 0x33c   :  { %1661 = vmatpush3.msk.msra.mxu1 %vm484_vm6, %v1644_v7  ;;  %vm612_vm6 = vcmp.eq.s32.totalorder %v1941_v31, %v1286_v16 }
 0x33d   :  { %1662 = vmatprep.subr.msk.mxu1 %vm483_vm7, %v450_v8 }
 0x33e   :  { %1663 = vmatpush3.msk.msra.mxu1 %vm483_vm7, %v450_v8  ;;  %vm611_vm7 = vcmp.eq.s32.totalorder %v1946_v33, %v1286_v16 }
 0x33f   :  { %1664 = vmatprep.subr.msk.mxu1 %vm482_vm8, %v1647_v9 }
 0x340   :  { %1665 = vmatpush3.msk.msra.mxu1 %vm482_vm8, %v1647_v9  ;;  %vm610_vm8 = vcmp.eq.s32.totalorder %v1953_v35, %v1286_v16 }
 0x341   :  { %1666 = vmatprep.subr.msk.mxu1 %vm481_vm9, %v460_v10 }
 0x342   :  { %1667 = vmatpush3.msk.msra.mxu1 %vm481_vm9, %v460_v10  ;;  %vm609_vm9 = vcmp.eq.s32.totalorder %v1958_v37, %v1286_v16 }
 0x343   :  { %1668 = vmatprep.subr.msk.mxu1 %vm480_vm10, %v1644_v7 }
 0x344   :  { %1669 = vmatpush3.msk.msra.mxu1 %vm480_vm10, %v1644_v7  ;;  %vm608_vm10 = vcmp.eq.s32.totalorder %v1965_v39, %v1286_v16 }
 0x345   :  { %1670 = vmatprep.subr.msk.mxu1 %vm479_vm11, %v450_v8 }
 0x346   :  { %1671 = vmatpush3.msk.msra.mxu1 %vm479_vm11, %v450_v8  ;;  %vm607_vm11 = vcmp.eq.s32.totalorder %v1970_v41, %v1286_v16 }
 0x347   :  { %1672 = vmatprep.subr.msk.mxu1 %vm478_vm12, %v1647_v9 }
 0x348   :  { %1673 = vmatpush3.msk.msra.mxu1 %vm478_vm12, %v1647_v9  ;;  %vm606_vm12 = vcmp.eq.s32.totalorder %v1977_v43, %v1286_v16 }
 0x349   :  { %1674 = vmatprep.subr.msk.mxu1 %vm477_vm13, %v460_v10 }
 0x34a   :  { %1675 = vmatpush3.msk.msra.mxu1 %vm477_vm13, %v460_v10  ;;  %vm605_vm13 = vcmp.eq.s32.totalorder %v1982_v45, %v1286_v16 }
 0x34b   :  { %1676 = vmatprep.subr.msk.mxu1 %vm476_vm14, %v1644_v7 }
 0x34c   :  { %1677 = vmatpush3.msk.msra.mxu1 %vm476_vm14, %v1644_v7  ;;  %vm604_vm14 = vcmp.eq.s32.totalorder %v1988_v46, %v1286_v16 }
 0x34d   :  { %1678 = vmatprep.subr.msk.mxu1 %vm475_vm15, %v450_v8 }
 0x34e   :  { %1679 = vmatpush3.msk.msra.mxu1 %vm475_vm15, %v450_v8  ;;  %vm603_vm15 = vcmp.eq.s32.totalorder %v1993_v47, %v1286_v16 }
 0x34f   :  { %1681 = vmatmul.mubr.f32.vlgmr.msra.gmra.mxu1 %v1266_v11  ;;  %v1159_v11 = vpop.permute.xlu0 %1158 }
 0x350   :  { %1683 = vmatprep.mubr.f32.mxu1 %v1267_v12 }
 0x353   :  { %1684 = vmatmul.mubr.f32.gmra.mxu1 %v1268_v14  ;;  %v1164_v14 = vpop.permute.xlu1 %1163 }
 0x354   :  { %1756 = vmatprep.mubr.f32.mxu1 %v1309_v29 }
 0x357   :  { %v1174_v29 = vpop.permute.xlu1 %1173 }
 0x40f   :  { %v1682_v18 = vpop.f32.mrf.mxu1 }
 0x411   :  { %v578_v19 = vpop.f32.mrf.mxu1 }
 0x413   :  { %v1685_v21 = vpop.f32.mrf.mxu1 }
 0x414   :  { %1686 = vmatprep.subr.msk.mxu0 %vm618_vm0, %v1685_v21 }
 0x415   :  { %v588_v22 = vpop.f32.mrf.mxu1  ;;  %1687 = vmatpush3.msk.msra.mxu0 %vm618_vm0, %v1685_v21  ;;  %vm746_vm0 = vcmp.eq.s32.totalorder %v1899_v13, %v1308_v30 }
 0x416   :  { %1688 = vmatprep.subr.msk.mxu0 %vm617_vm1, %v588_v22 }
 0x417   :  { %1689 = vmatpush3.msk.msra.mxu0 %vm617_vm1, %v588_v22  ;;  %vm745_vm1 = vcmp.eq.s32.totalorder %v1910_v17, %v1308_v30 }
 0x418   :  { %1690 = vmatprep.subr.msk.mxu0 %vm616_vm2, %v1682_v18 }
 0x419   :  { %1691 = vmatpush3.msk.msra.mxu0 %vm616_vm2, %v1682_v18  ;;  %vm744_vm2 = vcmp.eq.s32.totalorder %v1915_v20, %v1308_v30 }
 0x41a   :  { %1692 = vmatprep.subr.msk.mxu0 %vm615_vm3, %v578_v19 }
 0x41b   :  { %1693 = vmatpush3.msk.msra.mxu0 %vm615_vm3, %v578_v19  ;;  %vm743_vm3 = vcmp.eq.s32.totalorder %v1924_v23, %v1308_v30 }
 0x41c   :  { %1694 = vmatprep.subr.msk.mxu0 %vm614_vm4, %v1685_v21 }
 0x41d   :  { %1695 = vmatpush3.msk.msra.mxu0 %vm614_vm4, %v1685_v21  ;;  %vm742_vm4 = vcmp.eq.s32.totalorder %v1929_v26, %v1308_v30 }
 0x41e   :  { %1696 = vmatprep.subr.msk.mxu0 %vm613_vm5, %v588_v22 }
 0x41f   :  { %1697 = vmatpush3.msk.msra.mxu0 %vm613_vm5, %v588_v22  ;;  %vm741_vm5 = vcmp.eq.s32.totalorder %v1934_v28, %v1308_v30 }
 0x420   :  { %1698 = vmatprep.subr.msk.mxu0 %vm612_vm6, %v1682_v18 }
 0x421   :  { %1699 = vmatpush3.msk.msra.mxu0 %vm612_vm6, %v1682_v18  ;;  %vm740_vm6 = vcmp.eq.s32.totalorder %v1941_v31, %v1308_v30 }
 0x422   :  { %1700 = vmatprep.subr.msk.mxu0 %vm611_vm7, %v578_v19 }
 0x423   :  { %1701 = vmatpush3.msk.msra.mxu0 %vm611_vm7, %v578_v19  ;;  %vm739_vm7 = vcmp.eq.s32.totalorder %v1946_v33, %v1308_v30 }
 0x424   :  { %1702 = vmatprep.subr.msk.mxu0 %vm610_vm8, %v1685_v21 }
 0x425   :  { %1703 = vmatpush3.msk.msra.mxu0 %vm610_vm8, %v1685_v21  ;;  %vm738_vm8 = vcmp.eq.s32.totalorder %v1953_v35, %v1308_v30 }
 0x426   :  { %1704 = vmatprep.subr.msk.mxu0 %vm609_vm9, %v588_v22 }
 0x427   :  { %1705 = vmatpush3.msk.msra.mxu0 %vm609_vm9, %v588_v22  ;;  %vm737_vm9 = vcmp.eq.s32.totalorder %v1958_v37, %v1308_v30 }
 0x428   :  { %1706 = vmatprep.subr.msk.mxu0 %vm608_vm10, %v1682_v18 }
 0x429   :  { %1707 = vmatpush3.msk.msra.mxu0 %vm608_vm10, %v1682_v18  ;;  %vm736_vm10 = vcmp.eq.s32.totalorder %v1965_v39, %v1308_v30 }
 0x42a   :  { %1708 = vmatprep.subr.msk.mxu0 %vm607_vm11, %v578_v19 }
 0x42b   :  { %1709 = vmatpush3.msk.msra.mxu0 %vm607_vm11, %v578_v19  ;;  %vm735_vm11 = vcmp.eq.s32.totalorder %v1970_v41, %v1308_v30 }
 0x42c   :  { %1710 = vmatprep.subr.msk.mxu0 %vm606_vm12, %v1685_v21 }
 0x42d   :  { %1711 = vmatpush3.msk.msra.mxu0 %vm606_vm12, %v1685_v21  ;;  %vm734_vm12 = vcmp.eq.s32.totalorder %v1977_v43, %v1308_v30 }
 0x42e   :  { %1712 = vmatprep.subr.msk.mxu0 %vm605_vm13, %v588_v22 }
 0x42f   :  { %1713 = vmatpush3.msk.msra.mxu0 %vm605_vm13, %v588_v22  ;;  %vm733_vm13 = vcmp.eq.s32.totalorder %v1982_v45, %v1308_v30 }
 0x430   :  { %1714 = vmatprep.subr.msk.mxu0 %vm604_vm14, %v1682_v18 }
 0x431   :  { %1715 = vmatpush3.msk.msra.mxu0 %vm604_vm14, %v1682_v18  ;;  %vm732_vm14 = vcmp.eq.s32.totalorder %v1988_v46, %v1308_v30 }
 0x432   :  { %1716 = vmatprep.subr.msk.mxu0 %vm603_vm15, %v578_v19 }
 0x433   :  { %1717 = vmatpush3.msk.msra.mxu0 %vm603_vm15, %v578_v19  ;;  %vm731_vm15 = vcmp.eq.s32.totalorder %v1993_v47, %v1308_v30 }
 0x434   :  { %1719 = vmatmul.mubr.f32.vlgmr.msra.gmra.mxu0 %v1288_v24  ;;  %v1169_v24 = vpop.permute.xlu0 %1168 }
 0x435   :  { %1721 = vmatprep.mubr.f32.mxu0 %v1289_v25 }
 0x438   :  { %1722 = vmatmul.mubr.f32.gmra.mxu0 %v1290_v27 }
 0x439   :  { %1794 = vmatprep.mubr.f32.mxu0 %v1331_v48 }
 0x4f4   :  { %v1720_v32 = vpop.f32.mrf.mxu0 }
 0x4f6   :  { %v706_v34 = vpop.f32.mrf.mxu0 }
 0x4f8   :  { %v1723_v36 = vpop.f32.mrf.mxu0 }
 0x4f9   :  { %1724 = vmatprep.subr.msk.mxu1 %vm746_vm0, %v1723_v36 }
 0x4fa   :  { %v716_v38 = vpop.f32.mrf.mxu0  ;;  %1725 = vmatpush3.msk.msra.mxu1 %vm746_vm0, %v1723_v36  ;;  %vm874_vm0 = vcmp.eq.s32.totalorder %v1899_v13, %v1330_v49 }
 0x4fb   :  { %1726 = vmatprep.subr.msk.mxu1 %vm745_vm1, %v716_v38 }
 0x4fc   :  { %1727 = vmatpush3.msk.msra.mxu1 %vm745_vm1, %v716_v38  ;;  %vm873_vm1 = vcmp.eq.s32.totalorder %v1910_v17, %v1330_v49 }
 0x4fd   :  { %1728 = vmatprep.subr.msk.mxu1 %vm744_vm2, %v1720_v32 }
 0x4fe   :  { %1729 = vmatpush3.msk.msra.mxu1 %vm744_vm2, %v1720_v32  ;;  %vm872_vm2 = vcmp.eq.s32.totalorder %v1915_v20, %v1330_v49 }
 0x4ff   :  { %1730 = vmatprep.subr.msk.mxu1 %vm743_vm3, %v706_v34 }
 0x500   :  { %1731 = vmatpush3.msk.msra.mxu1 %vm743_vm3, %v706_v34  ;;  %vm871_vm3 = vcmp.eq.s32.totalorder %v1924_v23, %v1330_v49 }
 0x501   :  { %1732 = vmatprep.subr.msk.mxu1 %vm742_vm4, %v1723_v36 }
 0x502   :  { %1733 = vmatpush3.msk.msra.mxu1 %vm742_vm4, %v1723_v36  ;;  %vm870_vm4 = vcmp.eq.s32.totalorder %v1929_v26, %v1330_v49 }
 0x503   :  { %1734 = vmatprep.subr.msk.mxu1 %vm741_vm5, %v716_v38 }
 0x504   :  { %1735 = vmatpush3.msk.msra.mxu1 %vm741_vm5, %v716_v38  ;;  %vm869_vm5 = vcmp.eq.s32.totalorder %v1934_v28, %v1330_v49 }
 0x505   :  { %1736 = vmatprep.subr.msk.mxu1 %vm740_vm6, %v1720_v32 }
 0x506   :  { %1737 = vmatpush3.msk.msra.mxu1 %vm740_vm6, %v1720_v32  ;;  %vm868_vm6 = vcmp.eq.s32.totalorder %v1941_v31, %v1330_v49 }
 0x507   :  { %1738 = vmatprep.subr.msk.mxu1 %vm739_vm7, %v706_v34 }
 0x508   :  { %1739 = vmatpush3.msk.msra.mxu1 %vm739_vm7, %v706_v34  ;;  %vm867_vm7 = vcmp.eq.s32.totalorder %v1946_v33, %v1330_v49 }
 0x509   :  { %1740 = vmatprep.subr.msk.mxu1 %vm738_vm8, %v1723_v36 }
 0x50a   :  { %1741 = vmatpush3.msk.msra.mxu1 %vm738_vm8, %v1723_v36  ;;  %vm866_vm8 = vcmp.eq.s32.totalorder %v1953_v35, %v1330_v49 }
 0x50b   :  { %1742 = vmatprep.subr.msk.mxu1 %vm737_vm9, %v716_v38 }
 0x50c   :  { %1743 = vmatpush3.msk.msra.mxu1 %vm737_vm9, %v716_v38  ;;  %vm865_vm9 = vcmp.eq.s32.totalorder %v1958_v37, %v1330_v49 }
 0x50d   :  { %1744 = vmatprep.subr.msk.mxu1 %vm736_vm10, %v1720_v32 }
 0x50e   :  { %1745 = vmatpush3.msk.msra.mxu1 %vm736_vm10, %v1720_v32  ;;  %vm864_vm10 = vcmp.eq.s32.totalorder %v1965_v39, %v1330_v49 }
 0x50f   :  { %1746 = vmatprep.subr.msk.mxu1 %vm735_vm11, %v706_v34 }
 0x510   :  { %1747 = vmatpush3.msk.msra.mxu1 %vm735_vm11, %v706_v34  ;;  %vm863_vm11 = vcmp.eq.s32.totalorder %v1970_v41, %v1330_v49 }
 0x511   :  { %1748 = vmatprep.subr.msk.mxu1 %vm734_vm12, %v1723_v36 }
 0x512   :  { %1749 = vmatpush3.msk.msra.mxu1 %vm734_vm12, %v1723_v36  ;;  %vm862_vm12 = vcmp.eq.s32.totalorder %v1977_v43, %v1330_v49 }
 0x513   :  { %1750 = vmatprep.subr.msk.mxu1 %vm733_vm13, %v716_v38 }
 0x514   :  { %1751 = vmatpush3.msk.msra.mxu1 %vm733_vm13, %v716_v38  ;;  %vm861_vm13 = vcmp.eq.s32.totalorder %v1982_v45, %v1330_v49 }
 0x515   :  { %1752 = vmatprep.subr.msk.mxu1 %vm732_vm14, %v1720_v32 }
 0x516   :  { %1753 = vmatpush3.msk.msra.mxu1 %vm732_vm14, %v1720_v32  ;;  %vm860_vm14 = vcmp.eq.s32.totalorder %v1988_v46, %v1330_v49 }
 0x517   :  { %1754 = vmatprep.subr.msk.mxu1 %vm731_vm15, %v706_v34 }
 0x518   :  { %1755 = vmatpush3.msk.msra.mxu1 %vm731_vm15, %v706_v34  ;;  %vm859_vm15 = vcmp.eq.s32.totalorder %v1993_v47, %v1330_v49 }
 0x519   :  { %1757 = vmatmul.mubr.f32.vlgmr.msra.gmra.mxu1 %v1310_v40 }
 0x51a   :  { %1759 = vmatprep.mubr.f32.mxu1 %v1311_v42 }
 0x51d   :  { %1760 = vmatmul.mubr.f32.gmra.mxu1 %v1312_v44 }
 0x51e   :  { %1832 = vmatprep.mubr.f32.mxu1 %v1353_v57 }
 0x5d9   :  { %v1758_v50 = vpop.f32.mrf.mxu1 }
 0x5db   :  { %v834_v51 = vpop.f32.mrf.mxu1 }
 0x5dd   :  { %v1761_v52 = vpop.f32.mrf.mxu1 }
 0x5de   :  { %1762 = vmatprep.subr.msk.mxu0 %vm874_vm0, %v1761_v52 }
 0x5df   :  { %v844_v53 = vpop.f32.mrf.mxu1  ;;  %1763 = vmatpush3.msk.msra.mxu0 %vm874_vm0, %v1761_v52  ;;  %vm1002_vm0 = vcmp.eq.s32.totalorder %v1899_v13, %v1352_v58  ;;  %v1354_v13 = vld [vmem:[%s2234_s1 + $0xe8] sm:$0xff] }
 0x5e0   :  { %1764 = vmatprep.subr.msk.mxu0 %vm873_vm1, %v844_v53 }
 0x5e1   :  { %1765 = vmatpush3.msk.msra.mxu0 %vm873_vm1, %v844_v53  ;;  %vm1001_vm1 = vcmp.eq.s32.totalorder %v1910_v17, %v1352_v58  ;;  %v1355_v17 = vld [vmem:[%s2234_s1 + $0xf0] sm:$0xff] }
 0x5e2   :  { %1766 = vmatprep.subr.msk.mxu0 %vm872_vm2, %v1758_v50 }
 0x5e3   :  { %1767 = vmatpush3.msk.msra.mxu0 %vm872_vm2, %v1758_v50  ;;  %vm1000_vm2 = vcmp.eq.s32.totalorder %v1915_v20, %v1352_v58  ;;  %v1356_v20 = vld [vmem:[%s2234_s1 + $0xf8] sm:$0xff] }
 0x5e4   :  { %1768 = vmatprep.subr.msk.mxu0 %vm871_vm3, %v834_v51 }
 0x5e5   :  { %1769 = vmatpush3.msk.msra.mxu0 %vm871_vm3, %v834_v51  ;;  %vm999_vm3 = vcmp.eq.s32.totalorder %v1924_v23, %v1352_v58 }
 0x5e6   :  { %1770 = vmatprep.subr.msk.mxu0 %vm870_vm4, %v1761_v52 }
 0x5e7   :  { %1771 = vmatpush3.msk.msra.mxu0 %vm870_vm4, %v1761_v52  ;;  %vm998_vm4 = vcmp.eq.s32.totalorder %v1929_v26, %v1352_v58 }
 0x5e8   :  { %1772 = vmatprep.subr.msk.mxu0 %vm869_vm5, %v844_v53 }
 0x5e9   :  { %1773 = vmatpush3.msk.msra.mxu0 %vm869_vm5, %v844_v53  ;;  %vm997_vm5 = vcmp.eq.s32.totalorder %v1934_v28, %v1352_v58 }
 0x5ea   :  { %1774 = vmatprep.subr.msk.mxu0 %vm868_vm6, %v1758_v50 }
 0x5eb   :  { %1775 = vmatpush3.msk.msra.mxu0 %vm868_vm6, %v1758_v50  ;;  %vm996_vm6 = vcmp.eq.s32.totalorder %v1941_v31, %v1352_v58 }
 0x5ec   :  { %1776 = vmatprep.subr.msk.mxu0 %vm867_vm7, %v834_v51 }
 0x5ed   :  { %1777 = vmatpush3.msk.msra.mxu0 %vm867_vm7, %v834_v51  ;;  %vm995_vm7 = vcmp.eq.s32.totalorder %v1946_v33, %v1352_v58 }
 0x5ee   :  { %1778 = vmatprep.subr.msk.mxu0 %vm866_vm8, %v1761_v52 }
 0x5ef   :  { %1779 = vmatpush3.msk.msra.mxu0 %vm866_vm8, %v1761_v52  ;;  %vm994_vm8 = vcmp.eq.s32.totalorder %v1953_v35, %v1352_v58 }
 0x5f0   :  { %1780 = vmatprep.subr.msk.mxu0 %vm865_vm9, %v844_v53 }
 0x5f1   :  { %1781 = vmatpush3.msk.msra.mxu0 %vm865_vm9, %v844_v53  ;;  %vm993_vm9 = vcmp.eq.s32.totalorder %v1958_v37, %v1352_v58 }
 0x5f2   :  { %1782 = vmatprep.subr.msk.mxu0 %vm864_vm10, %v1758_v50 }
 0x5f3   :  { %1783 = vmatpush3.msk.msra.mxu0 %vm864_vm10, %v1758_v50  ;;  %vm992_vm10 = vcmp.eq.s32.totalorder %v1965_v39, %v1352_v58 }
 0x5f4   :  { %1784 = vmatprep.subr.msk.mxu0 %vm863_vm11, %v834_v51 }
 0x5f5   :  { %1785 = vmatpush3.msk.msra.mxu0 %vm863_vm11, %v834_v51  ;;  %vm991_vm11 = vcmp.eq.s32.totalorder %v1970_v41, %v1352_v58 }
 0x5f6   :  { %1786 = vmatprep.subr.msk.mxu0 %vm862_vm12, %v1761_v52 }
 0x5f7   :  { %1787 = vmatpush3.msk.msra.mxu0 %vm862_vm12, %v1761_v52  ;;  %vm990_vm12 = vcmp.eq.s32.totalorder %v1977_v43, %v1352_v58 }
 0x5f8   :  { %1788 = vmatprep.subr.msk.mxu0 %vm861_vm13, %v844_v53 }
 0x5f9   :  { %1789 = vmatpush3.msk.msra.mxu0 %vm861_vm13, %v844_v53  ;;  %vm989_vm13 = vcmp.eq.s32.totalorder %v1982_v45, %v1352_v58 }
 0x5fa   :  { %1790 = vmatprep.subr.msk.mxu0 %vm860_vm14, %v1758_v50 }
 0x5fb   :  { %1791 = vmatpush3.msk.msra.mxu0 %vm860_vm14, %v1758_v50  ;;  %vm988_vm14 = vcmp.eq.s32.totalorder %v1988_v46, %v1352_v58 }
 0x5fc   :  { %1792 = vmatprep.subr.msk.mxu0 %vm859_vm15, %v834_v51 }
 0x5fd   :  { %1793 = vmatpush3.msk.msra.mxu0 %vm859_vm15, %v834_v51  ;;  %vm987_vm15 = vcmp.eq.s32.totalorder %v1993_v47, %v1352_v58 }
 0x5fe   :  { %1795 = vmatmul.mubr.f32.vlgmr.msra.gmra.mxu0 %v1332_v54 }
 0x5ff   :  { %1797 = vmatprep.mubr.f32.mxu0 %v1333_v55 }
 0x602   :  { %1798 = vmatmul.mubr.f32.gmra.mxu0 %v1334_v56 }
 0x6be   :  { %v1796_v59 = vpop.f32.mrf.mxu0 }
 0x6c0   :  { %v962_v60 = vpop.f32.mrf.mxu0 }
 0x6c2   :  { %v1799_v61 = vpop.f32.mrf.mxu0 }
 0x6c3   :  { %1800 = vmatprep.subr.msk.mxu1 %vm1002_vm0, %v1799_v61 }
 0x6c4   :  { %v972_v62 = vpop.f32.mrf.mxu0  ;;  %1801 = vmatpush3.msk.msra.mxu1 %vm1002_vm0, %v1799_v61 }
 0x6c5   :  { %1802 = vmatprep.subr.msk.mxu1 %vm1001_vm1, %v972_v62 }
 0x6c6   :  { %1803 = vmatpush3.msk.msra.mxu1 %vm1001_vm1, %v972_v62 }
 0x6c7   :  { %1804 = vmatprep.subr.msk.mxu1 %vm1000_vm2, %v1796_v59 }
 0x6c8   :  { %1805 = vmatpush3.msk.msra.mxu1 %vm1000_vm2, %v1796_v59 }
 0x6c9   :  { %1806 = vmatprep.subr.msk.mxu1 %vm999_vm3, %v962_v60 }
 0x6ca   :  { %1807 = vmatpush3.msk.msra.mxu1 %vm999_vm3, %v962_v60 }
 0x6cb   :  { %1808 = vmatprep.subr.msk.mxu1 %vm998_vm4, %v1799_v61 }
 0x6cc   :  { %1809 = vmatpush3.msk.msra.mxu1 %vm998_vm4, %v1799_v61 }
 0x6cd   :  { %1810 = vmatprep.subr.msk.mxu1 %vm997_vm5, %v972_v62 }
 0x6ce   :  { %1811 = vmatpush3.msk.msra.mxu1 %vm997_vm5, %v972_v62 }
 0x6cf   :  { %1812 = vmatprep.subr.msk.mxu1 %vm996_vm6, %v1796_v59 }
 0x6d0   :  { %1813 = vmatpush3.msk.msra.mxu1 %vm996_vm6, %v1796_v59 }
 0x6d1   :  { %1814 = vmatprep.subr.msk.mxu1 %vm995_vm7, %v962_v60 }
 0x6d2   :  { %1815 = vmatpush3.msk.msra.mxu1 %vm995_vm7, %v962_v60 }
 0x6d3   :  { %1816 = vmatprep.subr.msk.mxu1 %vm994_vm8, %v1799_v61 }
 0x6d4   :  { %1817 = vmatpush3.msk.msra.mxu1 %vm994_vm8, %v1799_v61 }
 0x6d5   :  { %1818 = vmatprep.subr.msk.mxu1 %vm993_vm9, %v972_v62 }
 0x6d6   :  { %1819 = vmatpush3.msk.msra.mxu1 %vm993_vm9, %v972_v62 }
 0x6d7   :  { %1820 = vmatprep.subr.msk.mxu1 %vm992_vm10, %v1796_v59 }
 0x6d8   :  { %1821 = vmatpush3.msk.msra.mxu1 %vm992_vm10, %v1796_v59 }
 0x6d9   :  { %1822 = vmatprep.subr.msk.mxu1 %vm991_vm11, %v962_v60 }
 0x6da   :  { %1823 = vmatpush3.msk.msra.mxu1 %vm991_vm11, %v962_v60 }
 0x6db   :  { %1824 = vmatprep.subr.msk.mxu1 %vm990_vm12, %v1799_v61 }
 0x6dc   :  { %1825 = vmatpush3.msk.msra.mxu1 %vm990_vm12, %v1799_v61 }
 0x6dd   :  { %1826 = vmatprep.subr.msk.mxu1 %vm989_vm13, %v972_v62 }
 0x6de   :  { %1827 = vmatpush3.msk.msra.mxu1 %vm989_vm13, %v972_v62 }
 0x6df   :  { %1828 = vmatprep.subr.msk.mxu1 %vm988_vm14, %v1796_v59 }
 0x6e0   :  { %1829 = vmatpush3.msk.msra.mxu1 %vm988_vm14, %v1796_v59 }
 0x6e1   :  { %1830 = vmatprep.subr.msk.mxu1 %vm987_vm15, %v962_v60 }
 0x6e2   :  { %1831 = vmatpush3.msk.msra.mxu1 %vm987_vm15, %v962_v60 }
 0x6e3   :  { %1833 = vmatmul.mubr.f32.vlgmr.msra.gmra.mxu1 %v1354_v13 }
 0x6e4   :  { %1835 = vmatprep.mubr.f32.mxu1 %v1355_v17 }
 0x6e7   :  { %1836 = vmatmul.mubr.f32.gmra.mxu1 %v1356_v20 }
 0x7a3   :  { %v1834_v23 = vpop.f32.mrf.mxu1 }
 0x7a4   :  { %v1110_v35 = vand.u32 2147483647, %v1834_v23 }
 0x7a5   :  { %v1090_v26 = vpop.f32.mrf.mxu1 }
 0x7a6   :  { %v1109_v31 = vand.u32 2147483647, %v1090_v26 }
 0x7a7   :  { %v1837_v28 = vpop.f32.mrf.mxu1 }
 0x7a8   :  { %v1112_v37 = vand.u32 2147483647, %v1837_v28  ;;  %v1113_v41 = vmax.f32.f32 %v1109_v31, %v1110_v35 }
 0x7a9   :  { %v1100_v33 = vpop.f32.mrf.mxu1 }
 0x7aa   :  { %v1111_v39 = vand.u32 2147483647, %v1100_v33 }
 0x7ac   :  { %v1114_v43 = vmax.f32.f32 %v1111_v39, %v1112_v37 }
 0x7ae   :  { %v1115_v45 = vmax.f32.f32 %v1113_v41, %v1114_v43 }
 0x7b0   :  { %v1116_v46 = vrot.slane %v1115_v45, 4 }
 0x7b2   :  { %v1117_v47 = vmax.f32 %v1115_v45, %v1116_v46 }
 0x7b4   :  { %v1118_v63 = vrot.slane %v1117_v47, 2 }
 0x7b6   :  { %v1119_v0 = vmax.f32 %v1117_v47, %v1118_v63 }
 0x7b8   :  { %v1120_v1 = vrot.slane %v1119_v0, 1 }
 0x7ba   :  { %v1121_v2 = vmax.f32 %v1119_v0, %v1120_v1 }
 0x7bc   :  { %v1123_v3 = vshra.s32 %v1121_v2, 23  ;;  %vm1125_vm2 = vcmp.gt.f32.partialorder %v1121_v2, 0.0 }
 0x7be   :  { %v1373_v4 = vadd.s32 4294967169, %v1123_v3 }
 0x7c0   :  { %vm1126_vm0 = vcmp.gt.s32.totalorder %v1373_v4, 4294967170 }
 0x7c1   :  { %v1127_v5 = vsel %vm1126_vm0, %v1373_v4, 4294967170 }
 0x7c2   :  { %vm1128_vm1 = vcmp.lt.s32.totalorder %v1127_v5, 126 }
 0x7c3   :  { %v1129_v7 = vsel %vm1128_vm1, %v1127_v5, 126 }
 0x7c4   :  { %v1130_v8 = vsel %vm1125_vm2, %v1129_v7, 0 }
 0x7c5   :  { %v1131_v9 = vsub.s32 127, %v1130_v8  ;;  %v1143_v10 = vadd.s32 %v1142_v6, %v1130_v8 }
 0x7c7   :  { %v1132_v12 = vshll.u32 %v1131_v9, 23  ;;  %1144 = vst [vmem:[#allocation3] sm:$0x1] %v1143_v10 }
 0x7c9   :  { %v1134_v15 = vmul.f32 %v1132_v12, %v1090_v26  ;;  %v1135_v16 = vmul.f32 %v1834_v23, %v1132_v12  ;;  %v1136_v18 = vmul.f32 %v1132_v12, %v1100_v33  ;;  %v1137_v19 = vmul.f32 %v1837_v28, %v1132_v12 }
 0x7cb   :  { %v1176_v21 = vmul.f32 %v1159_v11, %v1134_v15  ;;  %v1177_v22 = vmul.f32 %v1164_v14, %v1135_v16  ;;  %v1178_v25 = vmul.f32 %v1169_v24, %v1136_v18  ;;  %v1179_v30 = vmul.f32 %v1174_v29, %v1137_v19 }
 0x7cd   :  { %v1180_v27 = vadd.f32 %v1177_v22, %v1176_v21 }
 0x7ce   :  { %v1192_v50 = vld [vmem:[#allocation3] sm:$0x1] }
 0x7cf   :  { %v1181_v32 = vadd.f32 %v1180_v27, %v1178_v25  ;;  %v1193_v51 = vcvt.s32.f32 %v1192_v50 }
 0x7d1   :  { %v1182_v34 = vadd.f32 %v1181_v32, %v1179_v30  ;;  %v1194_v54 = vmul.f32 0.6931472, %v1193_v51 }
 0x7d3   :  { %v1183_v36 = vrot.slane %v1182_v34, 4 }
 0x7d5   :  { %v1184_v38 = vadd.f32 %v1183_v36, %v1182_v34 }
 0x7d7   :  { %v1185_v40 = vrot.slane %v1184_v38, 2 }
 0x7d9   :  { %v1186_v42 = vadd.f32 %v1185_v40, %v1184_v38 }
 0x7db   :  { %v1187_v44 = vrot.slane %v1186_v42, 1 }
 0x7dd   :  { %v1188_v48 = vadd.f32 %v1187_v44, %v1186_v42 }
 0x7df   :  { %v1189_v49 = vand.u32 2147483647, %v1188_v48 }
 0x7e1   :  { %1841 = vlog2.f32 %v1189_v49 }
 0x7ee   :  { %v1842_v52 = vpop.eup %1841 }
 0x7ef   :  { %v1191_v53 = vmul.f32 0.6931472, %v1842_v52 }
 0x7f1   :  { %v1195_v55 = vadd.f32 %v1194_v54, %v1191_v53 }
 0x7f3   :  { %v1196_v56 = vmul.f32 2.0, %v1195_v55 }
 0x7f5   :  { %1197 = vst [vmem:[%s2236_s4] sm:$0x1] %v1196_v56 }

</bundles_post_ra>
